<compile_context>
chip_gen: v7x
topology: tpu7x:2x2x1
jax: 0.10.0
libtpu: 0.0.40
codegen_flags: <defaults>
</compile_context>

<pallas_src>
import functools

import jax
import jax.numpy as jnp
from jax.experimental import pallas as pl
from jax.experimental.pallas import tpu as pltpu

# ----------------------------------------------------------------------------
# Config / constants (synthetic stand-ins for the torchcv configer machinery)
# ----------------------------------------------------------------------------
BASE_LOSS_DICT = {'ce_loss': 0, 'kl_loss': 1, 'tri_loss': 2, 'ls_loss': 3}

LOSS_TYPE = {
    'ts_klce_loss': {'main': {}, 'peer': {'ce_loss0': 1.0}, 'peer_kl_loss0': 100.0},
    'ce_loss': {'main': {'ce_loss0': 1.0, 'ce_loss1': 0.01},
                'peer': {'ce_loss0': 1.0, 'ce_loss1': 0.01}},
    'klce_loss': {'main': {'ce_loss0': 1.0, 'ce_loss1': 0.01},
                  'peer': {'ce_loss0': 1.0, 'ce_loss1': 0.01},
                  'main_kl_loss0': 1.0, 'peer_kl_loss0': 1.0},
}

CONFIG = {
    ('loss', 'loss_type'): 'klce_loss',
    ('data', 'num_classes'): [10, 8],
    ('network', 'distill_method'): 'teacher-student',   # -> temperature = 10.0
}


class Configer:
    def get(self, *keys, default=None):
        if len(keys) == 1 and '.' in keys[0]:
            keys = tuple(keys[0].split('.'))
        return CONFIG.get(tuple(keys), default)


# ----------------------------------------------------------------------------
# Fused Pallas kernel
# ----------------------------------------------------------------------------
_HEAD_W = 128            # lane-dense padded width holding all 4 heads (>= 2*(K0+K1))
_LANES = 128             # TPU lane width
_TILE_ROWS_CAP = 512     # max sublane rows per streamed x block (<=256 KiB/block)
_PACKED_W_BUDGET = 8 * 1024 * 1024   # f32 bytes allowed for replicated packed weights


def _distill_fused_kernel(x_ref, w1_ref, b1_ref, wh_ref, c_ref,
                          out_ref, out_t_ref, acc_ref, *, inv_spatial, inv_t):
    """Fused main+peer backbone (1x1 conv) + relu + avg-pool + packed heads + 1/T.

    Grid = (B, n_rows // tile_r).  Axis 0 ("parallel"): one batch element per block.
    Axis 1 ("arbitrary"): spatial reduction, accumulated in acc_ref.

    The same body serves both layouts:
      unpacked: x block (tile_r, C),        w1 (C, 2F),          acc (1, 2F)
      packed:   x block (tile_r, G*C=128),  w1 (G*C, G*2F),      acc (1, G*2F)
    In the packed case the head matrix wh is stacked G times, so the final
    matmul also performs the cross-group reduction.
    """
    s = pl.program_id(1)

    @pl.when(s == 0)
    def _():
        acc_ref[...] = jnp.zeros_like(acc_ref)

    x = x_ref[0]                                                       # (tile_r, K)
    # Backbone for main||peer in one MXU matmul; f32 accumulation.
    h = jnp.dot(x, w1_ref[...], preferred_element_type=jnp.float32)    # (tile_r, n_mid)
    h = jnp.maximum(h + b1_ref[...], 0.0)                              # bias + relu (f32)
    # Partial global-average-pool: sublane reduction into the resident scratch.
    acc_ref[...] += jnp.sum(h, axis=0, keepdims=True)                  # (1, n_mid)

    @pl.when(s == pl.num_programs(1) - 1)
    def _():
        pooled = acc_ref[...] * inv_spatial                            # (1, n_mid)
        # All four heads packed block-diagonally into a single lane-dense matmul.
        logits = jnp.dot(pooled.astype(wh_ref.dtype), wh_ref[...],
                         preferred_element_type=jnp.float32) + c_ref[...]   # (1, 128)
        out_ref[0] = logits                                            # unmasked 128-wide store
        out_t_ref[0] = logits * inv_t                                  # fused temperature div


def _pick_tile_rows(n_rows, cap=_TILE_ROWS_CAP):
    """Row tile: full extent when small, else largest sublane-aligned divisor <= cap."""
    if n_rows <= cap:
        return n_rows            # block dim == array dim is always legal
    t = cap - (cap % 8)
    while t >= 8:
        if n_rows % t == 0:
            return t
        t -= 8
    return n_rows                # pathological shape: fall back to a single big block


def distill_forward(x_nchw, fused, *, temperature, use_bf16=False):
    """Single pallas_call producing (logits, logits / temperature), each (B, 128)."""
    B, C, H, W = x_nchw.shape
    S = H * W

    # NCHW -> (B, S, C): channels fastest-varying per spatial position.
    x_bsc = jnp.transpose(x_nchw, (0, 2, 3, 1)).reshape(B, S, C)

    G = fused.get('pack_g', 0)
    if G and S % G == 0:
        # Lane-dense packed path: G spatial positions share one 128-lane row.
        x3d = x_bsc.reshape(B, S // G, G * C)
        w1, b1, wh = fused['w1_p'], fused['b1_p'], fused['wh_p']
    else:
        # Fallback: spatial on sublanes, C on (padded) lanes.
        x3d = x_bsc
        w1, b1, wh = fused['w1'], fused['b1'], fused['wh']
    c = fused['c']

    if use_bf16:
        # bf16 MXU inputs (v6e/v7x), f32 accumulation inside the kernel; biases stay f32.
        x3d = x3d.astype(jnp.bfloat16)
        w1 = w1.astype(jnp.bfloat16)
        wh = wh.astype(jnp.bfloat16)

    n_rows, k_dim = x3d.shape[1], x3d.shape[2]
    n_mid = w1.shape[1]
    tile_r = _pick_tile_rows(n_rows)

    # NOTE: temperature is a static config constant here; if it ever becomes a
    # traced value it must be passed as an SMEM scalar instead of a partial.
    kernel = functools.partial(_distill_fused_kernel,
                               inv_spatial=float(1.0 / S),
                               inv_t=float(1.0 / temperature))

    out, out_t = pl.pallas_call(
        kernel,
        out_shape=(jax.ShapeDtypeStruct((B, 1, _HEAD_W), jnp.float32),
                   jax.ShapeDtypeStruct((B, 1, _HEAD_W), jnp.float32)),
        grid_spec=pltpu.PrefetchScalarGridSpec(
            num_scalar_prefetch=0,
            grid=(B, n_rows // tile_r),
            in_specs=[
                # streamed, double-buffered x tiles
                pl.BlockSpec((1, tile_r, k_dim), lambda b, s: (b, s, 0)),
                # weights: constant block index -> fetched once, VMEM-resident
                pl.BlockSpec(w1.shape, lambda b, s: (0, 0)),
                pl.BlockSpec(b1.shape, lambda b, s: (0, 0)),
                pl.BlockSpec(wh.shape, lambda b, s: (0, 0)),
                pl.BlockSpec(c.shape, lambda b, s: (0, 0)),
            ],
            out_specs=[
                pl.BlockSpec((1, 1, _HEAD_W), lambda b, s: (b, 0, 0)),
                pl.BlockSpec((1, 1, _HEAD_W), lambda b, s: (b, 0, 0)),
            ],
            scratch_shapes=[pltpu.VMEM((1, n_mid), jnp.float32)],
        ),
        compiler_params=pltpu.CompilerParams(
            dimension_semantics=("parallel", "arbitrary"),
            vmem_limit_bytes=32 * 1024 * 1024,
        ),
    )(x3d, w1, b1, wh, c)
    return out.reshape(B, _HEAD_W), out_t.reshape(B, _HEAD_W)


def _slice_heads(logits, k0, k1):
    nk = k0 + k1
    return {
        'main_out0': logits[:, 0:k0],
        'main_out1': logits[:, k0:nk],
        'peer_out0': logits[:, nk:nk + k0],
        'peer_out1': logits[:, nk + k0:2 * nk],
    }


# ----------------------------------------------------------------------------
# Parameters (per-model) and fused packing
# ----------------------------------------------------------------------------
def init_cls_params(key, in_ch, feat, num_classes):
    k1, k2, k3 = jax.random.split(key, 3)
    return {
        'w1': 0.1 * jax.random.normal(k1, (in_ch, feat), jnp.float32),
        'b1': jnp.zeros((1, feat), jnp.float32),
        'wh0': 0.1 * jax.random.normal(k2, (feat, num_classes[0]), jnp.float32),
        'c0': jnp.zeros((1, num_classes[0]), jnp.float32),
        'wh1': 0.1 * jax.random.normal(k3, (feat, num_classes[1]), jnp.float32),
        'c1': jnp.zeros((1, num_classes[1]), jnp.float32),
    }


def build_fused_params(main_p, peer_p):
    """Pack main+peer backbones along N and all 4 heads into one (2F, 128) matrix.

    Also precomputes the lane-dense "channel packed" replicas (kron / tile)
    used when H*W is a multiple of G = 128 // C and the replicated weights fit
    a small VMEM budget.
    """
    in_ch = main_p['w1'].shape[0]
    feat = main_p['w1'].shape[1]
    k0 = main_p['wh0'].shape[1]
    k1 = main_p['wh1'].shape[1]
    nk = k0 + k1
    assert 2 * nk <= _HEAD_W
    w1 = jnp.concatenate([main_p['w1'], peer_p['w1']], axis=1)          # (C, 2F)
    b1 = jnp.concatenate([main_p['b1'], peer_p['b1']], axis=1)          # (1, 2F)
    wh = jnp.zeros((2 * feat, _HEAD_W), jnp.float32)
    wh = wh.at[:feat, 0:k0].set(main_p['wh0'])
    wh = wh.at[:feat, k0:nk].set(main_p['wh1'])
    wh = wh.at[feat:, nk:nk + k0].set(peer_p['wh0'])
    wh = wh.at[feat:, nk + k0:2 * nk].set(peer_p['wh1'])
    c = jnp.zeros((1, _HEAD_W), jnp.float32)
    c = c.at[:, 0:k0].set(main_p['c0'])
    c = c.at[:, k0:nk].set(main_p['c1'])
    c = c.at[:, nk:nk + k0].set(peer_p['c0'])
    c = c.at[:, nk + k0:2 * nk].set(peer_p['c1'])

    fused = {'w1': w1, 'b1': b1, 'wh': wh, 'c': c,
             'k0': k0, 'k1': k1, 'pack_g': 0}

    two_f = 2 * feat
    if in_ch <= _LANES and _LANES % in_ch == 0:
        G = _LANES // in_ch
        packed_bytes = 4 * (G * in_ch * G * two_f + G * two_f * _HEAD_W)
        if packed_bytes <= _PACKED_W_BUDGET:
            fused['pack_g'] = G
            # block-diagonal replication of the backbone: (G*C, G*2F)
            fused['w1_p'] = jnp.kron(jnp.eye(G, dtype=w1.dtype), w1)
            # per-group bias: (1, G*2F)
            fused['b1_p'] = jnp.tile(b1, (1, G))
            # stacked heads -> the head matmul also reduces across the G groups
            fused['wh_p'] = jnp.tile(wh, (G, 1))                        # (G*2F, 128)
    return fused


# ----------------------------------------------------------------------------
# Model wrappers (bookkeeping identical to the original module; compute fused)
# ----------------------------------------------------------------------------
class ClsModel:
    """Bookkeeping half of the original ClsModel; the compute path is fused
    into DistillModel's single pallas_call."""

    def __init__(self, configer, loss_dict, flag):
        self.configer = configer
        self.valid_loss_dict = loss_dict
        self.flag = flag

    def build_dicts(self, outs, data_dict):
        out_dict, label_dict, loss_dict = {}, {}, {}
        for i, out in enumerate(outs):
            out_dict['{}_out{}'.format(self.flag, i)] = out
            label_dict['{}_label{}'.format(self.flag, i)] = data_dict['label{}'.format(i)]
            ce_key = 'ce_loss{}'.format(i)
            if ce_key in self.valid_loss_dict:
                loss_dict['{}_ce_loss{}'.format(self.flag, i)] = dict(
                    params=[out, data_dict['label{}'.format(i)]],
                    type=jnp.array([BASE_LOSS_DICT['ce_loss']], jnp.int32),
                    weight=jnp.array([self.valid_loss_dict[ce_key]], jnp.float32),
                )
        return out_dict, label_dict, loss_dict


class DistillModel:
    def __init__(self, configer, key, *, in_ch=4, feat=32, use_bf16=False):
        self.configer = configer
        self.valid_loss_dict = LOSS_TYPE[configer.get('loss', 'loss_type')]
        num_classes = configer.get('data', 'num_classes')
        k_main, k_peer = jax.random.split(key)
        self.main_params = init_cls_params(k_main, in_ch, feat, num_classes)
        self.peer_params = init_cls_params(k_peer, in_ch, feat, num_classes)
        self.fused = build_fused_params(self.main_params, self.peer_params)
        self.main = ClsModel(configer, self.valid_loss_dict['main'], 'main')
        self.peer = ClsModel(configer, self.valid_loss_dict['peer'], 'peer')
        self.use_bf16 = use_bf16
        self.temperature = 1.0
        if configer.get('network.distill_method', default=None) == 'teacher-student':
            self.temperature = 10.0
            # TODO(synk): teacher freeze (requires_grad=False) is a training-time
            # concern; the forward pass is unchanged, so no Pallas equivalent here.
        else:
            assert configer.get('network.distill_method', default=None) in (
                None, 'teacher-student', 'student-student')

    def __call__(self, data_dict):
        logits, logits_over_t = distill_forward(
            data_dict['img'], self.fused,
            temperature=self.temperature, use_bf16=self.use_bf16)
        k0, k1 = self.fused['k0'], self.fused['k1']
        heads = _slice_heads(logits, k0, k1)
        heads_t = _slice_heads(logits_over_t, k0, k1)

        main_out_dict, main_label_dict, main_loss_dict = self.main.build_dicts(
            [heads['main_out0'], heads['main_out1']], data_dict)
        peer_out_dict, peer_label_dict, peer_loss_dict = self.peer.build_dicts(
            [heads['peer_out0'], heads['peer_out1']], data_dict)
        out_dict = {**main_out_dict, **peer_out_dict}
        label_dict = {**main_label_dict, **peer_label_dict}
        loss_dict = {**main_loss_dict, **peer_loss_dict}

        for i in range(len(self.configer.get('data', 'num_classes'))):
            if 'main_kl_loss{}'.format(i) in self.valid_loss_dict:
                loss_dict['main_kl_loss{}'.format(i)] = dict(
                    params=[out_dict['main_out{}'.format(i)],
                            jax.lax.stop_gradient(out_dict['peer_out{}'.format(i)])],
                    type=jnp.array([BASE_LOSS_DICT['kl_loss']], jnp.int32),
                    weight=jnp.array([self.valid_loss_dict['main_kl_loss{}'.format(i)]],
                                     jnp.float32),
                )
            if 'peer_kl_loss{}'.format(i) in self.valid_loss_dict:
                loss_dict['peer_kl_loss{}'.format(i)] = dict(
                    params=[heads_t['peer_out{}'.format(i)],
                            jax.lax.stop_gradient(heads_t['main_out{}'.format(i)])],
                    type=jnp.array([BASE_LOSS_DICT['kl_loss']], jnp.int32),
                    weight=jnp.array([self.valid_loss_dict['peer_kl_loss{}'.format(i)]],
                                     jnp.float32),
                )
        return out_dict, label_dict, loss_dict


# ----------------------------------------------------------------------------
# Pure-JAX reference for one ClsModel (correctness checking only)
# ----------------------------------------------------------------------------
def cls_forward_ref(x, params):
    B, C, H, W = x.shape
    x2d = jnp.transpose(x, (0, 2, 3, 1)).reshape(B * H * W, C)
    h = jnp.maximum(x2d @ params['w1'] + params['b1'], 0.0)
    pooled = h.reshape(B, H * W, -1).mean(axis=1)
    return pooled @ params['wh0'] + params['c0'], pooled @ params['wh1'] + params['c1']


if __name__ == "__main__":
    key = jax.random.PRNGKey(0)
    k_model, k_img, k_l0, k_l1, k_img2 = jax.random.split(key, 5)

    configer = Configer()
    model = DistillModel(configer, k_model)

    B, C, H, W = 2, 4, 16, 16
    num_classes = configer.get('data', 'num_classes')
    data_dict = {
        'img': jax.random.normal(k_img, (B, C, H, W), jnp.float32),
        'label0': jax.random.randint(k_l0, (B,), 0, num_classes[0]),
        'label1': jax.random.randint(k_l1, (B,), 0, num_classes[1]),
    }

    out_dict, label_dict, loss_dict = model(data_dict)
    jax.block_until_ready(out_dict['main_out0'])
    jax.block_until_ready(out_dict['peer_out1'])
    jax.block_until_ready(loss_dict['peer_kl_loss0']['params'][0])

    # sanity check against the pure-JAX reference (packed lane-dense path, f32)
    ref_m0, ref_m1 = cls_forward_ref(data_dict['img'], model.main_params)
    ref_p0, ref_p1 = cls_forward_ref(data_dict['img'], model.peer_params)
    assert jnp.allclose(out_dict['main_out0'], ref_m0, atol=1e-4, rtol=1e-4)
    assert jnp.allclose(out_dict['main_out1'], ref_m1, atol=1e-4, rtol=1e-4)
    assert jnp.allclose(out_dict['peer_out0'], ref_p0, atol=1e-4, rtol=1e-4)
    assert jnp.allclose(out_dict['peer_out1'], ref_p1, atol=1e-4, rtol=1e-4)
    assert jnp.allclose(loss_dict['peer_kl_loss0']['params'][0],
                        ref_p0 / model.temperature, atol=1e-4, rtol=1e-4)
    assert jnp.allclose(loss_dict['peer_kl_loss0']['params'][1],
                        ref_m0 / model.temperature, atol=1e-4, rtol=1e-4)
    assert 'main_kl_loss0' in loss_dict and 'main_kl_loss1' not in loss_dict

    # bf16 compute-path (v6e/v7x MXU) smoke check, f32 accumulation inside kernel
    logits_bf16, logits_t_bf16 = distill_forward(
        data_dict['img'], model.fused, temperature=model.temperature, use_bf16=True)
    jax.block_until_ready(logits_bf16)
    heads_bf16 = _slice_heads(logits_bf16, model.fused['k0'], model.fused['k1'])
    assert jnp.allclose(heads_bf16['main_out0'], ref_m0, atol=5e-2, rtol=5e-2)
    assert jnp.allclose(heads_bf16['peer_out1'], ref_p1, atol=5e-2, rtol=5e-2)

    # unpacked-fallback path (H*W not a multiple of 128 // C) correctness check
    img_odd = jax.random.normal(k_img2, (B, C, 5, 5), jnp.float32)
    logits_odd, _ = distill_forward(img_odd, model.fused,
                                    temperature=model.temperature, use_bf16=False)
    jax.block_until_ready(logits_odd)
    heads_odd = _slice_heads(logits_odd, model.fused['k0'], model.fused['k1'])
    ref_om0, ref_om1 = cls_forward_ref(img_odd, model.main_params)
    ref_op0, ref_op1 = cls_forward_ref(img_odd, model.peer_params)
    assert jnp.allclose(heads_odd['main_out0'], ref_om0, atol=1e-4, rtol=1e-4)
    assert jnp.allclose(heads_odd['peer_out1'], ref_op1, atol=1e-4, rtol=1e-4)

    print("KERNEL_OK")
</pallas_src>

<mosaic_0001>
module attributes {stable_mosaic.version = 11 : i64} {
  func.func @_distill_fused_kernel(%arg0: i32, %arg1: i32, %arg2: memref<1x8x128xf32, #tpu.memory_space<vmem>>, %arg3: memref<128x2048xf32, #tpu.memory_space<vmem>>, %arg4: memref<1x2048xf32, #tpu.memory_space<vmem>>, %arg5: memref<2048x128xf32, #tpu.memory_space<vmem>>, %arg6: memref<1x128xf32, #tpu.memory_space<vmem>>, %arg7: memref<1x1x128xf32, #tpu.memory_space<vmem>>, %arg8: memref<1x1x128xf32, #tpu.memory_space<vmem>>, %arg9: memref<1x2048xf32, #tpu.memory_space<vmem>>) attributes {dimension_semantics = [#tpu.dimension_semantics<parallel>, #tpu.dimension_semantics<arbitrary>], iteration_bounds = array<i64: 2, 1>, scalar_prefetch = 0 : i64, scratch_operands = 1 : i64, tpu.core_type = #tpu.core_type<tc>, window_params = [{transform_indices = @transform_0, window_bounds = array<i64: 1, 8, 128>}, {pipeline_mode = #tpu.pipeline_mode<synchronous>, transform_indices = @transform_1, window_bounds = array<i64: 128, 2048>}, {pipeline_mode = #tpu.pipeline_mode<synchronous>, transform_indices = @transform_2, window_bounds = array<i64: 1, 2048>}, {pipeline_mode = #tpu.pipeline_mode<synchronous>, transform_indices = @transform_3, window_bounds = array<i64: 2048, 128>}, {pipeline_mode = #tpu.pipeline_mode<synchronous>, transform_indices = @transform_4, window_bounds = array<i64: 1, 128>}, {transform_indices = @transform_5, window_bounds = array<i64: 1, 1, 128>}, {transform_indices = @transform_6, window_bounds = array<i64: 1, 1, 128>}]} {
    %c0_i32 = arith.constant 0 : i32
    %0 = arith.cmpi eq, %arg1, %c0_i32 : i32
    %1 = arith.extui %0 : i1 to i32
    %c0_i32_0 = arith.constant 0 : i32
    %2 = arith.cmpi ne, %1, %c0_i32_0 : i32
    scf.if %2 {
      %cst_15 = arith.constant 0.000000e+00 : f32
      %20 = vector.broadcast %cst_15 : f32 to vector<1x2048xf32>
      %c0_16 = arith.constant 0 : index
      %c0_17 = arith.constant 0 : index
      %21 = vector.load %arg9[%c0_16, %c0_17] : memref<1x2048xf32, #tpu.memory_space<vmem>>, vector<1x2048xf32>
      tpu.vector_store %arg9[%c0_16, %c0_17], %20 {strides = array<i32>} : memref<1x2048xf32, #tpu.memory_space<vmem>>, vector<1x2048xf32>,
    } else {
    }
    %c0 = arith.constant 0 : index
    %c0_1 = arith.constant 0 : index
    %c0_2 = arith.constant 0 : index
    %3 = vector.load %arg2[%c0, %c0_1, %c0_2] : memref<1x8x128xf32, #tpu.memory_space<vmem>>, vector<1x8x128xf32>
    %4 = vector.shape_cast %3 : vector<1x8x128xf32> to vector<8x128xf32>
    %c0_3 = arith.constant 0 : index
    %c0_4 = arith.constant 0 : index
    %5 = vector.load %arg3[%c0_3, %c0_4] : memref<128x2048xf32, #tpu.memory_space<vmem>>, vector<128x2048xf32>
    %cst = arith.constant dense<0.000000e+00> : vector<8x2048xf32>
    %6 = tpu.matmul %4, %5, %cst {dimension_numbers = #tpu.dot_dimension_numbers<[1], [0], [0], [1], [0, 0, 1, 1], [], []>} : vector<8x128xf32>, vector<128x2048xf32>, vector<8x2048xf32> -> vector<8x2048xf32>
    %c0_5 = arith.constant 0 : index
    %c0_6 = arith.constant 0 : index
    %7 = vector.load %arg4[%c0_5, %c0_6] : memref<1x2048xf32, #tpu.memory_space<vmem>>, vector<1x2048xf32>
    %8 = vector.broadcast %7 : vector<1x2048xf32> to vector<8x2048xf32>
    %9 = arith.addf %6, %8 : vector<8x2048xf32>
    %cst_7 = arith.constant 0.000000e+00 : f32
    %10 = vector.broadcast %cst_7 : f32 to vector<8x2048xf32>
    %11 = arith.maximumf %9, %10 : vector<8x2048xf32>
    %c0_8 = arith.constant 0 : index
    %c0_9 = arith.constant 0 : index
    %12 = vector.load %arg9[%c0_8, %c0_9] : memref<1x2048xf32, #tpu.memory_space<vmem>>, vector<1x2048xf32>
    %cst_10 = arith.constant dense<0.000000e+00> : vector<2048xf32>
    %13 = vector.multi_reduction <add>, %11, %cst_10 [0] : vector<8x2048xf32> to vector<2048xf32>
    %14 = vector.shape_cast %13 : vector<2048xf32> to vector<1x2048xf32>
    %15 = arith.addf %12, %14 : vector<1x2048xf32>
    %c0_11 = arith.constant 0 : index
    %c0_12 = arith.constant 0 : index
    %16 = vector.load %arg9[%c0_11, %c0_12] : memref<1x2048xf32, #tpu.memory_space<vmem>>, vector<1x2048xf32>
    tpu.vector_store %arg9[%c0_11, %c0_12], %15 {strides = array<i32>} : memref<1x2048xf32, #tpu.memory_space<vmem>>, vector<1x2048xf32>,
    %c0_i32_13 = arith.constant 0 : i32
    %17 = arith.cmpi eq, %arg1, %c0_i32_13 : i32
    %18 = arith.extui %17 : i1 to i32
    %c0_i32_14 = arith.constant 0 : i32
    %19 = arith.cmpi ne, %18, %c0_i32_14 : i32
    scf.if %19 {
      %c0_15 = arith.constant 0 : index
      %c0_16 = arith.constant 0 : index
      %20 = vector.load %arg9[%c0_15, %c0_16] : memref<1x2048xf32, #tpu.memory_space<vmem>>, vector<1x2048xf32>
      %cst_17 = arith.constant 3.906250e-03 : f32
      %21 = vector.broadcast %cst_17 : f32 to vector<1x2048xf32>
      %22 = arith.mulf %20, %21 : vector<1x2048xf32>
      %c0_18 = arith.constant 0 : index
      %c0_19 = arith.constant 0 : index
      %23 = vector.load %arg5[%c0_18, %c0_19] : memref<2048x128xf32, #tpu.memory_space<vmem>>, vector<2048x128xf32>
      %cst_20 = arith.constant dense<0.000000e+00> : vector<1x128xf32>
      %24 = tpu.matmul %22, %23, %cst_20 {dimension_numbers = #tpu.dot_dimension_numbers<[1], [0], [0], [1], [0, 0, 1, 1], [], []>} : vector<1x2048xf32>, vector<2048x128xf32>, vector<1x128xf32> -> vector<1x128xf32>
      %c0_21 = arith.constant 0 : index
      %c0_22 = arith.constant 0 : index
      %25 = vector.load %arg6[%c0_21, %c0_22] : memref<1x128xf32, #tpu.memory_space<vmem>>, vector<1x128xf32>
      %26 = arith.addf %24, %25 : vector<1x128xf32>
      %c0_23 = arith.constant 0 : index
      %c0_24 = arith.constant 0 : index
      %c0_25 = arith.constant 0 : index
      %27 = vector.load %arg7[%c0_23, %c0_24, %c0_25] : memref<1x1x128xf32, #tpu.memory_space<vmem>>, vector<1x1x128xf32>
      %28 = vector.shape_cast %27 : vector<1x1x128xf32> to vector<1x128xf32>
      %29 = vector.shape_cast %26 : vector<1x128xf32> to vector<1x1x128xf32>
      tpu.vector_store %arg7[%c0_23, %c0_24, %c0_25], %29 {strides = array<i32>} : memref<1x1x128xf32, #tpu.memory_space<vmem>>, vector<1x1x128xf32>,
      %cst_26 = arith.constant 1.000000e-01 : f32
      %30 = vector.broadcast %cst_26 : f32 to vector<1x128xf32>
      %31 = arith.mulf %26, %30 : vector<1x128xf32>
      %c0_27 = arith.constant 0 : index
      %c0_28 = arith.constant 0 : index
      %c0_29 = arith.constant 0 : index
      %32 = vector.load %arg8[%c0_27, %c0_28, %c0_29] : memref<1x1x128xf32, #tpu.memory_space<vmem>>, vector<1x1x128xf32>
      %33 = vector.shape_cast %32 : vector<1x1x128xf32> to vector<1x128xf32>
      %34 = vector.shape_cast %31 : vector<1x128xf32> to vector<1x1x128xf32>
      tpu.vector_store %arg8[%c0_27, %c0_28, %c0_29], %34 {strides = array<i32>} : memref<1x1x128xf32, #tpu.memory_space<vmem>>, vector<1x1x128xf32>,
    } else {
    }
    return
  }
  func.func @transform_0(%arg0: i32, %arg1: i32) -> (i32, i32, i32) {
    %c0_i32 = arith.constant 0 : i32
    %c0_i32_0 = arith.constant 0 : i32
    return %arg0, %arg1, %c0_i32 : i32, i32, i32
  }
  func.func @transform_1(%arg0: i32, %arg1: i32) -> (i32, i32) {
    %c0_i32 = arith.constant 0 : i32
    %c0_i32_0 = arith.constant 0 : i32
    %c0_i32_1 = arith.constant 0 : i32
    return %c0_i32, %c0_i32_0 : i32, i32
  }
  func.func @transform_2(%arg0: i32, %arg1: i32) -> (i32, i32) {
    %c0_i32 = arith.constant 0 : i32
    %c0_i32_0 = arith.constant 0 : i32
    %c0_i32_1 = arith.constant 0 : i32
    return %c0_i32, %c0_i32_0 : i32, i32
  }
  func.func @transform_3(%arg0: i32, %arg1: i32) -> (i32, i32) {
    %c0_i32 = arith.constant 0 : i32
    %c0_i32_0 = arith.constant 0 : i32
    %c0_i32_1 = arith.constant 0 : i32
    return %c0_i32, %c0_i32_0 : i32, i32
  }
  func.func @transform_4(%arg0: i32, %arg1: i32) -> (i32, i32) {
    %c0_i32 = arith.constant 0 : i32
    %c0_i32_0 = arith.constant 0 : i32
    %c0_i32_1 = arith.constant 0 : i32
    return %c0_i32, %c0_i32_0 : i32, i32
  }
  func.func @transform_5(%arg0: i32, %arg1: i32) -> (i32, i32, i32) {
    %c0_i32 = arith.constant 0 : i32
    %c0_i32_0 = arith.constant 0 : i32
    %c0_i32_1 = arith.constant 0 : i32
    return %arg0, %c0_i32, %c0_i32_0 : i32, i32, i32
  }
  func.func @transform_6(%arg0: i32, %arg1: i32) -> (i32, i32, i32) {
    %c0_i32 = arith.constant 0 : i32
    %c0_i32_0 = arith.constant 0 : i32
    %c0_i32_1 = arith.constant 0 : i32
    return %arg0, %c0_i32, %c0_i32_0 : i32, i32, i32
  }
}

</mosaic_0001>

<bundles_post_ra>
// kernel: tpu_custom_call.1
= control target key start
LH: loop header
LB: loop body
LE: loop exit
PB: predicated region body
PF: predicated region fallthrough
CT: control target
= control target key end

     0   :  { %s4198_s0 = inlined_call_operand.hbm [shape: f32[2,8,128], index: 0, kind: input, shape index: {}]   ;;  %s4199_s1 = inlined_call_operand.hbm [shape: f32[128,2048], index: 1, kind: input, shape index: {}]   ;;  %s4200_s2 = inlined_call_operand.hbm [shape: f32[1,2048], index: 2, kind: input, shape index: {}]   ;;  %s4201_s3 = inlined_call_operand.hbm [shape: f32[2048,128], index: 3, kind: input, shape index: {}]   ;;  %s4202_s4 = inlined_call_operand.vmem [shape: f32[1,128], index: 4, kind: input, shape index: {}]   ;;  %s4203_s5 = inlined_call_operand.hbm [shape: f32[2,1,128], index: 5, kind: output, shape index: {0}]   ;;  %s4204_s6 = inlined_call_operand.hbm [shape: f32[2,1,128], index: 6, kind: output, shape index: {1}]  }
   0x1   :  { %4212 = sst [smem:[#allocation21_spill]] %s4204_s6 }
   0x2   :  { %12 = vsyncpa [#allocation4], 0 }
   0x3   :  { %14 = vsyncpa [#allocation4 + $0x1], 0 }
   0x4   :  { %15 = vsyncpa [#allocation7], 0 }
   0x5   :  { %16 = vsyncpa [#allocation10], 0 }
   0x6   :  { %17 = vsyncpa [#allocation5], 0 }
   0x7   :  { %19 = vsyncpa [#allocation5 + $0x1], 0 }
   0x8   :  { %20 = vsyncpa [#allocation13], 0 }
   0x9   :  { %22 = vsyncpa [#allocation13 + $0x1], 0  ;;  %s3750_s21 = smov 0   ;;  %s3752_s22 = smov 0  }
   0xa   :  { %s3754_s23 = smov 0   ;;  %s3756_s24 = smov 0  }
   0xb   :  { %s3758_s25 = smov 0   ;;  %s3760_s26 = smov 0  }
   0xc LB: > { %4213 = sst [smem:[#allocation19_spill]] %s3682_s21  ;;  %s2553_s27 = sadd.s32 4294967295, %s3702_s26   ;;  %s3702_s26 = sphi %s3760_s26, %s28_s26   ;;  %s3698_s25 = sphi %s3758_s25, %s4237_s25   ;;  %s3694_s24 = sphi %s3756_s24, %s4236_s24   ;;  %s3690_s23 = sphi %s3754_s23, %s4235_s23   ;;  %s3686_s22 = sphi %s3752_s22, %s4234_s22   ;;  %s3682_s21 = sphi %s3750_s21, %s4233_s21  }
   0xd   : > { %s2554_s28 = sadd.s32 4294967294, %s3702_s26   ;;  %p62_p0 = scmp.ne.s32.totalorder %s3686_s22, %s3682_s21 }
   0xe   : > { %p3784_p1 = scmp.eq.s32.totalorder %s2553_s27, 0  ;;  %p3788_p2 = scmp.eq.s32.totalorder %s2553_s27, 1 }
   0xf   : > { %p176_p3 = scmp.eq.s32.totalorder %s2554_s28, 1  ;;  %p2555_p5 = scmp.ge.s32.totalorder %s3702_s26, 1 }
  0x10   : > { %s4214_s29 = scalar_select %p3784_p1, 1, 0 }
  0x11   : > { %s4215_s30 = scalar_select %p3788_p2, 1, 0 }
  0x12   : > { %p3794_p4 = por %p3784_p1, %p62_p0  ;;  %p3799_p6 = por %p176_p3, %p62_p0 }
  0x13   : > { %p209_p7 = scmp.lt.s32.totalorder %s3702_s26, 3  ;;  %s3704_s10 = smov [#allocation6]  }
  0x14   : > { %s4216_s7 = scalar_select %p3794_p4, 1, 0 }
  0x15   : > { %s4217_s8 = scalar_select %p3799_p6, 1, 0 }
  0x16   : > { %p3804_p8 = pnand %p2555_p5, %p209_p7  ;;  %s221_s11 = sshll.u32 %s3704_s10, 4  ;;  %s3808_s11 = int_to_ptr.vmem [resolvable:$true] %s221_s11 }
  0x17   : > { %4218 = sst [smem:[#allocation20_spill]] %s4217_s8  ;;  %s3705_s13 = smov [#allocation8]  }
  0x18   : > { %s4219_s9 = scalar_select %p3804_p8, 1, 0 }
  0x19   : > { %p3381_p9 = pneg %p3804_p8  ;;  %s235_s14 = sshll.u32 %s3705_s13, 4  ;;  %s3819_s14 = int_to_ptr.vmem [resolvable:$true] %s235_s14 }
  0x1a   : > { %s3706_s15 = smov [#allocation9]   ;;  %s3466_s19 = scalar_lea.hbm %s4199_s1, 32768 }
  0x1b   : > { %p3815_p11 = pnand %p3381_p9, %p3784_p1  ;;  %s3821_s16 = sshll.u32 %s3706_s15, 4  ;;  %s246_s16 = int_to_ptr.vmem [resolvable:$true] %s3821_s16 }
  0x1c   : > { %p3467_p12 = scmp.ne.s32.totalorder %s4199_s1, %s3466_s19  ;;  %p3473_p5 = scmp.lt.u32.totalorder %s3466_s19, %s4199_s1 }
  0x1d   : > { %p3831_p13 = pneg %p3815_p11 }
  0x1f   : > { %p3469_p0 = pnand %p3831_p13, %p3467_p12 }
  0x21   : > { %p3470_p3 = pneg %p3469_p0 }
  0x23   : > { %p3475_p7 = pnand %p3473_p5, %p3470_p3 }
  0x25   : > { %3478 = shalt.err (!%p3475_p7)
}
  0x26   : > { %s3479_s15 = scalar_lea.vmem %s3808_s11, 32768  ;;  %p3487_p1 = scmp.lt.s32.totalorder %s3808_s11, %s3808_s11 }
  0x27   : > { %p3480_p9 = scmp.ne.s32.totalorder %s3808_s11, %s3479_s15  ;;  %p3488_p4 = scmp.lt.s32.totalorder %s3479_s15, %s3479_s15 }
  0x29   : > { %p3482_p10 = pnand %p3480_p9, %p3831_p13  ;;  %p3489_p12 = por %p3488_p4, %p3487_p1 }
  0x2b   : > { %p3483_p6 = pneg %p3482_p10 }
  0x2d   : > { %p3490_p0 = pnand %p3489_p12, %p3483_p6 }
  0x2f   : > { %3493 = shalt.err (!%p3490_p0)
}
  0x30   : > { %s3707_s17 = smov 2048   ;;  %s3708_s18 = smov 128  }
  0x31   : > { %3384 = dma.hbm_to_vmem [thread:$0]  (!%p3815_p11), %s4199_s1, 32768, %s3808_s11, [#allocation7], %s3707_s17, %s3707_s17, %s3708_s18  }
  0x32   : > { %s3494_s13 = scalar_lea.hbm %s4200_s2, 256 }
  0x33   : > { %p3495_p1 = scmp.ne.s32.totalorder %s4200_s2, %s3494_s13  ;;  %p3501_p10 = scmp.lt.u32.totalorder %s3494_s13, %s4200_s2 }
  0x35   : > { %p3497_p4 = pnand %p3495_p1, %p3831_p13 }
  0x37   : > { %p3498_p6 = pneg %p3497_p4 }
  0x39   : > { %p3503_p3 = pnand %p3501_p10, %p3498_p6 }
  0x3b   : > { %3506 = shalt.err (!%p3503_p3)
}
  0x3c   : > { %s3507_s11 = scalar_lea.vmem %s3819_s14, 256  ;;  %p3515_p12 = scmp.lt.s32.totalorder %s3819_s14, %s3819_s14 }
  0x3d   : > { %p3508_p5 = scmp.ne.s32.totalorder %s3819_s14, %s3507_s11  ;;  %p3516_p0 = scmp.lt.s32.totalorder %s3507_s11, %s3507_s11 }
  0x3f   : > { %p3510_p7 = pnand %p3508_p5, %p3831_p13  ;;  %p3517_p1 = por %p3516_p0, %p3515_p12 }
  0x41   : > { %p3511_p9 = pneg %p3510_p7 }
  0x43   : > { %p3518_p4 = pnand %p3517_p1, %p3511_p9 }
  0x45   : > { %3521 = shalt.err (!%p3518_p4)
}
  0x46   : > { %3387 = dma.hbm_to_vmem [thread:$0]  (!%p3815_p11), %s4200_s2, 256, %s3819_s14, [#allocation7]  }
  0x47   : > { %s3522_s19 = scalar_lea.hbm %s4201_s3, 32768 }
  0x48   : > { %p3523_p6 = scmp.ne.s32.totalorder %s4201_s3, %s3522_s19  ;;  %p3529_p5 = scmp.lt.u32.totalorder %s3522_s19, %s4201_s3 }
  0x4a   : > { %p3525_p10 = pnand %p3523_p6, %p3831_p13 }
  0x4c   : > { %p3526_p3 = pneg %p3525_p10 }
  0x4e   : > { %p3531_p7 = pnand %p3529_p5, %p3526_p3 }
  0x50   : > { %3534 = shalt.err (!%p3531_p7)
}
  0x51   : > { %s3535_s15 = scalar_lea.vmem %s246_s16, 32768  ;;  %p3543_p1 = scmp.lt.s32.totalorder %s246_s16, %s246_s16 }
  0x52   : > { %p3536_p9 = scmp.ne.s32.totalorder %s246_s16, %s3535_s15  ;;  %p3544_p4 = scmp.lt.s32.totalorder %s3535_s15, %s3535_s15 }
  0x54   : > { %p3538_p12 = pnand %p3536_p9, %p3831_p13  ;;  %p3545_p8 = por %p3544_p4, %p3543_p1 }
  0x56   : > { %p3539_p0 = pneg %p3538_p12 }
  0x58   : > { %p3546_p2 = pnand %p3545_p8, %p3539_p0 }
  0x5a   : > { %3549 = shalt.err (!%p3546_p2)
}
  0x5b   : > { %s3709_s14 = smov 8   ;;  %s40_s28 = sadd.s32 1, %s3698_s25 }
  0x5c   : > { %3390 = dma.hbm_to_vmem [thread:$0]  (!%p3815_p11), %s4201_s3, 32768, %s246_s16, [#allocation10], %s3708_s18, %s3708_s18, %s3709_s14  }
  0x5d   : > { %s49_s21 = sadd.s32 1, %s3690_s23  ;;  %p42_p2 = scmp.ge.s32.totalorder %s40_s28, 2 }
  0x5e   : > { %p56_p8 = scmp.ne.s32.totalorder %s3690_s23, %s3686_s22  ;;  %p57_p13 = scmp.eq.s32.totalorder %s3702_s26, 0 }
  0x5f   : > { %p3405_p6 = scmp.lt.s32.totalorder %s3702_s26, 2  ;;  %s4239_s28 = smov (%p42_p2, %s40_s28), 0 }
  0x60   : > { %p58_p10 = por %p57_p13, %p56_p8  ;;  %p4222_p3 = scmp.ne.s32.totalorder %s4215_s30, 0 }
  0x61   : > { %s44_s8 = ssub.s32 %s3698_s25, %s4239_s28  ;;  %s262_s17 = sand.u32 1, %s3690_s23  }
  0x62   : > { %p3907_p5 = por %p4222_p3, %p56_p8  ;;  %p47_p7 = scmp.eq.s32.totalorder %s44_s8, 0 }
  0x63   : > { %s2560_s16 = sshll.u32 %s262_s17, 3  ;;  %s2561_s18 = sshll.u32 %s3698_s25, 7 }
  0x64   : > { %s3916_s19 = scalar_select %p47_p7, %s3690_s23, %s49_s21  }
  0x65   : > { %s3921_s10 = scalar_lea.hbm %s4198_s0, %s2561_s18  ;;  %s266_s30 = scalar_lea.vmem [#allocation3], %s2560_s16 }
  0x66   : > { %s274_s13 = sshll.u32 %s266_s30, 4  ;;  %p3925_p11 = pnand %p3405_p6, %p58_p10  ;;  %s3929_s13 = int_to_ptr.vmem [resolvable:$true] %s274_s13 }
  0x67   : > { %s263_s14 = scalar_lea.sflag [#allocation4], %s262_s17  ;;  %s3550_s11 = scalar_lea.hbm %s3921_s10, 128 }
  0x68   : > { %p3551_p9 = scmp.ne.s32.totalorder %s3921_s10, %s3550_s11  ;;  %p3552_p12 = pneg %p3925_p11 }
  0x69   : > { %s3555_s8 = scalar_lea.hbm %s4198_s0, 256  ;;  %p3556_p4 = scmp.lt.u32.totalorder %s3921_s10, %s4198_s0 }
  0x6a   : > { %p3553_p0 = pnand %p3552_p12, %p3551_p9  ;;  %p3557_p2 = scmp.lt.u32.totalorder %s3555_s8, %s3550_s11 }
  0x6b   : > { %p3559_p13 = scmp.lt.u32.totalorder %s3550_s11, %s3921_s10 }
  0x6c   : > { %p3554_p1 = pneg %p3553_p0  ;;  %p3558_p8 = por %p3557_p2, %p3556_p4 }
  0x6e   : > { %p3560_p6 = por %p3559_p13, %p3558_p8 }
  0x70   : > { %p3561_p10 = pnand %p3560_p6, %p3554_p1 }
  0x72   : > { %3564 = shalt.err (!%p3561_p10)
}
  0x73   : > { %s3565_s17 = scalar_lea.vmem %s3929_s13, 128  ;;  %s3710_s20 = smov [#allocation3]  }
  0x74   : > { %p3566_p3 = scmp.ne.s32.totalorder %s3929_s13, %s3565_s17  ;;  %s3570_s27 = sshll.u32 %s3710_s20, 4  ;;  %s3571_s27 = int_to_ptr.vmem [resolvable:$false] %s3570_s27 }
  0x75   : > { %s3572_s30 = scalar_lea.vmem %s3571_s27, 256  ;;  %p3573_p0 = scmp.lt.s32.totalorder %s3929_s13, %s3571_s27 }
  0x76   : > { %p3568_p7 = pnand %p3566_p3, %p3552_p12  ;;  %p3574_p4 = scmp.lt.s32.totalorder %s3572_s30, %s3565_s17 }
  0x78   : > { %p3569_p9 = pneg %p3568_p7  ;;  %p3575_p2 = por %p3574_p4, %p3573_p0 }
  0x7a   : > { %p3576_p8 = pnand %p3575_p2, %p3569_p9 }
  0x7c   : > { %3579 = shalt.err (!%p3576_p8)
}
  0x7d   : > { %3394 = dma.hbm_to_vmem [thread:$0]  (!%p3925_p11), %s3921_s10, 128, %s3929_s13, %s263_s14  }
  0x7e   : > { %p4225_p1 = scmp.ne.s32.totalorder %s4219_s9, 0 }
  0x7f   : > { %s3959_s11 = sand.u32 (!%p4225_p1), 1, %s3686_s22   ;;  %p4226_p12 = scmp.ne.s32.totalorder (!%p4225_p1), %s4216_s7, 0 }
  0x80   : > { %283 = sbr.rel (%p4225_p1) target bundleno = 806 (0x326), region = 40  ;;  %s2563_s6 = sshll.u32 (!%p4225_p1), %s3959_s11, 3 }
  0x81   : > { %s286_s21 = scalar_lea.sflag (!%p4225_p1), [#allocation4], %s3959_s11  ;;  %s3963_s8 = scalar_lea.vmem (!%p4225_p1), [#allocation3], %s2563_s6 }
  0x87   : > { %3661 = dma.done.wait (%p4226_p12), %s286_s21, 128  }
  0x88   : > { %3663 = vsyncadd (%p4226_p12), %s286_s21, 4294967168  ;;  %p4227_p11 = scmp.ne.s32.totalorder %s4214_s29, 0 }
  0x8a   : > { %3665 = dma.done.wait (%p4227_p11), [#allocation7], 33024  }
  0x8b   : > { %3667 = vsyncadd (%p4227_p11), [#allocation7], 4294934272 }
  0x8c   : > { %3669 = dma.done.wait (%p4227_p11), [#allocation10], 32768  }
  0x8d   : > { %3671 = vsyncadd (%p4227_p11), [#allocation10], 4294934528  ;;  %v3711_v0 = vmov 0.0   ;;  %v341_v1 = vld [vmem:[#allocation6 + $0x8] sm:$0xff]  ;;  %v343_v3 = vld [vmem:[#allocation6 + $0x18] sm:$0xff]  ;;  %s2567_s9 = sshll.u32 %s3694_s24, 4 }
  0x8e   : > { %744 = vmatprep.mubr.f32.mxu0 %v3711_v0  ;;  %815 = vmatprep.mubr.f32.mxu1 %v3711_v0  ;;  %v357_v2 = vld [vmem:[#allocation6 + $0x88] sm:$0xff]  ;;  %v359_v5 = vld [vmem:[#allocation6 + $0x98] sm:$0xff]  ;;  %v340_v6 = vld [vmem:[#allocation6] sm:$0xff]  ;;  %s326_s10 = scalar_lea.vmem [#allocation11], %s3959_s11  ;;  %s332_s15 = scalar_lea.vmem [#allocation12], %s3959_s11 }
  0x8f   : > { %v2851_v4 = vpack.c.bf16 %v357_v2, %v341_v1  ;;  %v356_v7 = vld [vmem:[#allocation6 + $0x80] sm:$0xff]  ;;  %v2883_v8 = vpack.c.bf16 %v359_v5, %v343_v3  ;;  %v342_v10 = vld [vmem:[#allocation6 + $0x10] sm:$0xff]  ;;  %v373_v12 = vld [vmem:[#allocation6 + $0x108] sm:$0xff]  ;;  %s2408_s13 = sshll.u32 %s326_s10, 4  ;;  %s2421_s14 = sshll.u32 %s332_s15, 4  ;;  %s4120_s13 = int_to_ptr.vmem [resolvable:$true] %s2408_s13  ;;  %s4127_s14 = int_to_ptr.vmem [resolvable:$true] %s2421_s14 }
  0x90   : > { %v2853_v9 = vpack.c.bf16 %v356_v7, %v340_v6  ;;  %v358_v11 = vld [vmem:[#allocation6 + $0x90] sm:$0xff]  ;;  %v389_v14 = vld [vmem:[#allocation6 + $0x188] sm:$0xff]  ;;  %v375_v15 = vld [vmem:[#allocation6 + $0x118] sm:$0xff]  ;;  %s4118_s17 = scalar_lea.hbm %s4203_s5, %s2567_s9  ;;  %s4228_s27 = sld [smem:[#allocation21_spill]] }
  0x91   : > { %2852 = vmatprep.subr.bf16.mxu0 %v2851_v4  ;;  %v2885_v13 = vpack.c.bf16 %v358_v11, %v342_v10  ;;  %v391_v16 = vld [vmem:[#allocation6 + $0x198] sm:$0xff]  ;;  %2884 = vmatprep.subr.bf16.mxu1 %v2883_v8  ;;  %v2855_v17 = vpack.c.bf16 %v389_v14, %v373_v12  ;;  %v372_v19 = vld [vmem:[#allocation6 + $0x100] sm:$0xff]  ;;  %v374_v21 = vld [vmem:[#allocation6 + $0x110] sm:$0xff]  ;;  %s2392_s6 = scalar_lea.sflag [#allocation5], %s3959_s11  ;;  %s3580_s21 = scalar_lea.vmem %s4120_s13, 16 }
  0x92   : > { %2854 = vmatpush1.bf16.msra.mxu0 %v2853_v9  ;;  %v2887_v18 = vpack.c.bf16 %v391_v16, %v375_v15  ;;  %v388_v20 = vld [vmem:[#allocation6 + $0x180] sm:$0xff]  ;;  %v390_v23 = vld [vmem:[#allocation6 + $0x190] sm:$0xff]  ;;  %v405_v24 = vld [vmem:[#allocation6 + $0x208] sm:$0xff]  ;;  %p3581_p13 = scmp.ne.s32.totalorder %s4120_s13, %s3580_s21 }
  0x93   : > { %2886 = vmatpush1.bf16.msra.mxu1 %v2885_v13  ;;  %v2857_v22 = vpack.c.bf16 %v388_v20, %v372_v19  ;;  %v421_v25 = vld [vmem:[#allocation6 + $0x288] sm:$0xff]  ;;  %2856 = vmatprep.subr.bf16.mxu0 %v2855_v17  ;;  %v2889_v26 = vpack.c.bf16 %v390_v23, %v374_v21  ;;  %v407_v28 = vld [vmem:[#allocation6 + $0x218] sm:$0xff]  ;;  %v404_v30 = vld [vmem:[#allocation6 + $0x200] sm:$0xff] }
  0x94   : > { %2888 = vmatprep.subr.bf16.mxu1 %v2887_v18  ;;  %v2859_v27 = vpack.c.bf16 %v421_v25, %v405_v24  ;;  %v423_v29 = vld [vmem:[#allocation6 + $0x298] sm:$0xff]  ;;  %v420_v32 = vld [vmem:[#allocation6 + $0x280] sm:$0xff]  ;;  %v406_v33 = vld [vmem:[#allocation6 + $0x210] sm:$0xff]  ;;  %p3582_p6 = pnand %p3581_p13, %p3907_p5 }
  0x95   : > { %v2891_v31 = vpack.c.bf16 %v423_v29, %v407_v28  ;;  %v422_v34 = vld [vmem:[#allocation6 + $0x290] sm:$0xff]  ;;  %v2861_v35 = vpack.c.bf16 %v420_v32, %v404_v30  ;;  %v437_v36 = vld [vmem:[#allocation6 + $0x308] sm:$0xff]  ;;  %v439_v38 = vld [vmem:[#allocation6 + $0x318] sm:$0xff] }
  0x96   : > { %2858 = vmatpush1.bf16.msra.mxu0 %v2857_v22  ;;  %v453_v37 = vld [vmem:[#allocation6 + $0x388] sm:$0xff]  ;;  %v2893_v39 = vpack.c.bf16 %v422_v34, %v406_v33  ;;  %v455_v41 = vld [vmem:[#allocation6 + $0x398] sm:$0xff]  ;;  %v436_v42 = vld [vmem:[#allocation6 + $0x300] sm:$0xff]  ;;  %s4125_s30 = scalar_lea.hbm %s4228_s27, %s2567_s9  ;;  %p3583_p10 = pneg %p3582_p6 }
  0x97   : > { %2890 = vmatpush1.bf16.msra.mxu1 %v2889_v26  ;;  %2860 = vmatprep.subr.bf16.mxu0 %v2859_v27  ;;  %v2863_v40 = vpack.c.bf16 %v453_v37, %v437_v36  ;;  %v452_v43 = vld [vmem:[#allocation6 + $0x380] sm:$0xff]  ;;  %v2895_v44 = vpack.c.bf16 %v455_v41, %v439_v38  ;;  %v438_v45 = vld [vmem:[#allocation6 + $0x310] sm:$0xff]  ;;  %v469_v47 = vld [vmem:[#allocation6 + $0x408] sm:$0xff] }
  0x98   : > { %2892 = vmatprep.subr.bf16.mxu1 %v2891_v31  ;;  %v454_v46 = vld [vmem:[#allocation6 + $0x390] sm:$0xff]  ;;  %v485_v48 = vld [vmem:[#allocation6 + $0x488] sm:$0xff]  ;;  %v471_v49 = vld [vmem:[#allocation6 + $0x418] sm:$0xff]  ;;  %v2865_v51 = vpack.c.bf16 %v452_v43, %v436_v42 }
  0x99   : > { %v487_v50 = vld [vmem:[#allocation6 + $0x498] sm:$0xff]  ;;  %v2897_v52 = vpack.c.bf16 %v454_v46, %v438_v45  ;;  %v2867_v53 = vpack.c.bf16 %v485_v48, %v469_v47  ;;  %v468_v54 = vld [vmem:[#allocation6 + $0x400] sm:$0xff]  ;;  %v470_v56 = vld [vmem:[#allocation6 + $0x410] sm:$0xff] }
  0x9a   : > { %2862 = vmatpush1.bf16.msra.mxu0 %v2861_v35  ;;  %v484_v55 = vld [vmem:[#allocation6 + $0x480] sm:$0xff]  ;;  %v2899_v57 = vpack.c.bf16 %v487_v50, %v471_v49  ;;  %v486_v58 = vld [vmem:[#allocation6 + $0x490] sm:$0xff]  ;;  %v501_v59 = vld [vmem:[#allocation6 + $0x508] sm:$0xff] }
  0x9b   : > { %2894 = vmatpush1.bf16.msra.mxu1 %v2893_v39  ;;  %2864 = vmatprep.subr.bf16.mxu0 %v2863_v40  ;;  %v517_v60 = vld [vmem:[#allocation6 + $0x588] sm:$0xff]  ;;  %v503_v61 = vld [vmem:[#allocation6 + $0x518] sm:$0xff]  ;;  %v2869_v63 = vpack.c.bf16 %v484_v55, %v468_v54  ;;  %v2901_v1 = vpack.c.bf16 %v486_v58, %v470_v56  ;;  %v500_v3 = vld [vmem:[#allocation6 + $0x500] sm:$0xff] }
  0x9c   : > { %2896 = vmatprep.subr.bf16.mxu1 %v2895_v44  ;;  %v519_v62 = vld [vmem:[#allocation6 + $0x598] sm:$0xff]  ;;  %v2871_v2 = vpack.c.bf16 %v517_v60, %v501_v59  ;;  %v516_v4 = vld [vmem:[#allocation6 + $0x580] sm:$0xff]  ;;  %v502_v5 = vld [vmem:[#allocation6 + $0x510] sm:$0xff] }
  0x9d   : > { %v2903_v6 = vpack.c.bf16 %v519_v62, %v503_v61  ;;  %v518_v7 = vld [vmem:[#allocation6 + $0x590] sm:$0xff]  ;;  %v533_v8 = vld [vmem:[#allocation6 + $0x608] sm:$0xff]  ;;  %v535_v10 = vld [vmem:[#allocation6 + $0x618] sm:$0xff]  ;;  %v2873_v12 = vpack.c.bf16 %v516_v4, %v500_v3 }
  0x9e   : > { %2866 = vmatpush1.bf16.msra.mxu0 %v2865_v51  ;;  %v549_v9 = vld [vmem:[#allocation6 + $0x688] sm:$0xff]  ;;  %v551_v11 = vld [vmem:[#allocation6 + $0x698] sm:$0xff]  ;;  %v2905_v13 = vpack.c.bf16 %v518_v7, %v502_v5  ;;  %v532_v15 = vld [vmem:[#allocation6 + $0x600] sm:$0xff] }
  0x9f   : > { %2898 = vmatpush1.bf16.msra.mxu1 %v2897_v52  ;;  %2868 = vmatprep.subr.bf16.mxu0 %v2867_v53  ;;  %v2875_v14 = vpack.c.bf16 %v549_v9, %v533_v8  ;;  %v548_v16 = vld [vmem:[#allocation6 + $0x680] sm:$0xff]  ;;  %v534_v17 = vld [vmem:[#allocation6 + $0x610] sm:$0xff]  ;;  %v2907_v18 = vpack.c.bf16 %v551_v11, %v535_v10  ;;  %v565_v20 = vld [vmem:[#allocation6 + $0x708] sm:$0xff] }
  0xa0   : > { %2900 = vmatprep.subr.bf16.mxu1 %v2899_v57  ;;  %v550_v19 = vld [vmem:[#allocation6 + $0x690] sm:$0xff]  ;;  %v581_v21 = vld [vmem:[#allocation6 + $0x788] sm:$0xff]  ;;  %v567_v22 = vld [vmem:[#allocation6 + $0x718] sm:$0xff]  ;;  %v2877_v24 = vpack.c.bf16 %v548_v16, %v532_v15 }
  0xa1   : > { %v583_v23 = vld [vmem:[#allocation6 + $0x798] sm:$0xff]  ;;  %v2909_v25 = vpack.c.bf16 %v550_v19, %v534_v17  ;;  %v2879_v26 = vpack.c.bf16 %v581_v21, %v565_v20  ;;  %v564_v27 = vld [vmem:[#allocation6 + $0x700] sm:$0xff]  ;;  %v566_v29 = vld [vmem:[#allocation6 + $0x710] sm:$0xff] }
  0xa2   : > { %2870 = vmatpush1.bf16.msra.mxu0 %v2869_v63  ;;  %v580_v28 = vld [vmem:[#allocation6 + $0x780] sm:$0xff]  ;;  %v2911_v30 = vpack.c.bf16 %v583_v23, %v567_v22  ;;  %v582_v31 = vld [vmem:[#allocation6 + $0x790] sm:$0xff]  ;;  %v345_v32 = vld [vmem:[#allocation6 + $0x28] sm:$0xff] }
  0xa3   : > { %2902 = vmatpush1.bf16.msra.mxu1 %v2901_v1  ;;  %2872 = vmatprep.subr.bf16.mxu0 %v2871_v2  ;;  %v361_v33 = vld [vmem:[#allocation6 + $0xa8] sm:$0xff]  ;;  %v347_v34 = vld [vmem:[#allocation6 + $0x38] sm:$0xff]  ;;  %v2881_v36 = vpack.c.bf16 %v580_v28, %v564_v27  ;;  %v2913_v37 = vpack.c.bf16 %v582_v31, %v566_v29  ;;  %v344_v39 = vld [vmem:[#allocation6 + $0x20] sm:$0xff] }
  0xa4   : > { %2904 = vmatprep.subr.bf16.mxu1 %v2903_v6  ;;  %v363_v35 = vld [vmem:[#allocation6 + $0xb8] sm:$0xff]  ;;  %v2915_v38 = vpack.c.bf16 %v361_v33, %v345_v32  ;;  %v360_v40 = vld [vmem:[#allocation6 + $0xa0] sm:$0xff]  ;;  %v346_v41 = vld [vmem:[#allocation6 + $0x30] sm:$0xff] }
  0xa5   : > { %v2947_v42 = vpack.c.bf16 %v363_v35, %v347_v34  ;;  %v362_v43 = vld [vmem:[#allocation6 + $0xb0] sm:$0xff]  ;;  %v377_v44 = vld [vmem:[#allocation6 + $0x128] sm:$0xff]  ;;  %v379_v46 = vld [vmem:[#allocation6 + $0x138] sm:$0xff]  ;;  %v2917_v49 = vpack.c.bf16 %v360_v40, %v344_v39 }
  0xa6   : > { %2874 = vmatpush1.bf16.msra.mxu0 %v2873_v12  ;;  %v393_v45 = vld [vmem:[#allocation6 + $0x1a8] sm:$0xff]  ;;  %v395_v47 = vld [vmem:[#allocation6 + $0x1b8] sm:$0xff]  ;;  %v2949_v50 = vpack.c.bf16 %v362_v43, %v346_v41  ;;  %v376_v52 = vld [vmem:[#allocation6 + $0x120] sm:$0xff] }
  0xa7   : > { %2906 = vmatpush1.bf16.msra.mxu1 %v2905_v13  ;;  %2876 = vmatprep.subr.bf16.mxu0 %v2875_v14  ;;  %v3980_v48 = vld [vmem:[%s3963_s8] sm:$0xff]  ;;  %v2919_v51 = vpack.c.bf16 %v393_v45, %v377_v44  ;;  %v392_v53 = vld [vmem:[#allocation6 + $0x1a0] sm:$0xff]  ;;  %v2951_v55 = vpack.c.bf16 %v395_v47, %v379_v46  ;;  %v409_v57 = vld [vmem:[#allocation6 + $0x228] sm:$0xff]  ;;  %s3713_s8 = smov [#allocation11]  }
  0xa8   : > { %2908 = vmatprep.subr.bf16.mxu1 %v2907_v18  ;;  %v378_v54 = vld [vmem:[#allocation6 + $0x130] sm:$0xff]  ;;  %v425_v58 = vld [vmem:[#allocation6 + $0x2a8] sm:$0xff]  ;;  %v411_v59 = vld [vmem:[#allocation6 + $0x238] sm:$0xff]  ;;  %v2921_v61 = vpack.c.bf16 %v392_v53, %v376_v52  ;;  %s3584_s29 = sshll.u32 %s3713_s8, 4  ;;  %s3585_s29 = int_to_ptr.vmem [resolvable:$false] %s3584_s29 }
  0xa9   : > { %v394_v56 = vld [vmem:[#allocation6 + $0x1b0] sm:$0xff]  ;;  %v427_v60 = vld [vmem:[#allocation6 + $0x2b8] sm:$0xff]  ;;  %v2923_v63 = vpack.c.bf16 %v425_v58, %v409_v57  ;;  %v408_v1 = vld [vmem:[#allocation6 + $0x220] sm:$0xff]  ;;  %s3586_s7 = scalar_lea.vmem %s3585_s29, 32  ;;  %p3587_p3 = scmp.lt.s32.totalorder %s4120_s13, %s3585_s29 }
  0xaa   : > { %2878 = vmatpush1.bf16.msra.mxu0 %v2877_v24  ;;  %v2953_v62 = vpack.c.bf16 %v394_v56, %v378_v54  ;;  %v424_v2 = vld [vmem:[#allocation6 + $0x2a0] sm:$0xff]  ;;  %v410_v3 = vld [vmem:[#allocation6 + $0x230] sm:$0xff]  ;;  %v2955_v4 = vpack.c.bf16 %v427_v60, %v411_v59  ;;  %v441_v6 = vld [vmem:[#allocation6 + $0x328] sm:$0xff]  ;;  %p3588_p7 = scmp.lt.s32.totalorder %s3586_s7, %s3580_s21 }
  0xab   : > { %2910 = vmatpush1.bf16.msra.mxu1 %v2909_v25  ;;  %2880 = vmatprep.subr.bf16.mxu0 %v2879_v26  ;;  %v426_v5 = vld [vmem:[#allocation6 + $0x2b0] sm:$0xff]  ;;  %v457_v7 = vld [vmem:[#allocation6 + $0x3a8] sm:$0xff]  ;;  %v443_v8 = vld [vmem:[#allocation6 + $0x338] sm:$0xff]  ;;  %v2925_v10 = vpack.c.bf16 %v424_v2, %v408_v1 }
  0xac   : > { %2912 = vmatprep.subr.bf16.mxu1 %v2911_v30  ;;  %v459_v9 = vld [vmem:[#allocation6 + $0x3b8] sm:$0xff]  ;;  %v2957_v11 = vpack.c.bf16 %v426_v5, %v410_v3  ;;  %v2927_v12 = vpack.c.bf16 %v457_v7, %v441_v6  ;;  %v440_v13 = vld [vmem:[#allocation6 + $0x320] sm:$0xff]  ;;  %v442_v15 = vld [vmem:[#allocation6 + $0x330] sm:$0xff]  ;;  %p3589_p9 = por %p3588_p7, %p3587_p3 }
  0xad   : > { %v456_v14 = vld [vmem:[#allocation6 + $0x3a0] sm:$0xff]  ;;  %v2959_v16 = vpack.c.bf16 %v459_v9, %v443_v8  ;;  %v458_v17 = vld [vmem:[#allocation6 + $0x3b0] sm:$0xff]  ;;  %v473_v18 = vld [vmem:[#allocation6 + $0x428] sm:$0xff] }
  0xae   : > { %2882 = vmatpush1.bf16.msra.mxu0 %v2881_v36  ;;  %v489_v19 = vld [vmem:[#allocation6 + $0x4a8] sm:$0xff]  ;;  %v475_v20 = vld [vmem:[#allocation6 + $0x438] sm:$0xff]  ;;  %v2929_v22 = vpack.c.bf16 %v456_v14, %v440_v13  ;;  %v2961_v23 = vpack.c.bf16 %v458_v17, %v442_v15  ;;  %v472_v25 = vld [vmem:[#allocation6 + $0x420] sm:$0xff]  ;;  %p3590_p0 = pnand %p3589_p9, %p3583_p10 }
  0xaf   : > { %2914 = vmatpush1.bf16.msra.mxu1 %v2913_v37  ;;  %2916 = vmatprep.subr.bf16.mxu0 %v2915_v38  ;;  %v491_v21 = vld [vmem:[#allocation6 + $0x4b8] sm:$0xff]  ;;  %v2931_v24 = vpack.c.bf16 %v489_v19, %v473_v18  ;;  %v488_v26 = vld [vmem:[#allocation6 + $0x4a0] sm:$0xff]  ;;  %v474_v27 = vld [vmem:[#allocation6 + $0x430] sm:$0xff] }
  0xb0   : > { %2948 = vmatprep.subr.bf16.mxu1 %v2947_v42  ;;  %v2963_v28 = vpack.c.bf16 %v491_v21, %v475_v20  ;;  %v490_v29 = vld [vmem:[#allocation6 + $0x4b0] sm:$0xff]  ;;  %v505_v30 = vld [vmem:[#allocation6 + $0x528] sm:$0xff]  ;;  %v507_v32 = vld [vmem:[#allocation6 + $0x538] sm:$0xff]  ;;  %v2933_v34 = vpack.c.bf16 %v488_v26, %v472_v25 }
  0xb1   : > { %745 = vmatmul.mubr.f32.vlgmr.msra.gmra.mrb[0].mxu0 %v3980_v48  ;;  %v521_v31 = vld [vmem:[#allocation6 + $0x5a8] sm:$0xff]  ;;  %v523_v33 = vld [vmem:[#allocation6 + $0x5b8] sm:$0xff]  ;;  %v2965_v35 = vpack.c.bf16 %v490_v29, %v474_v27  ;;  %v504_v37 = vld [vmem:[#allocation6 + $0x520] sm:$0xff] }
  0xb2   : > { %816 = vmatmul.mubr.f32.vlgmr.msra.gmra.mrb[0].mxu1 %v3980_v48  ;;  %2918 = vmatpush1.bf16.msra.mxu0 %v2917_v49  ;;  %v2935_v36 = vpack.c.bf16 %v521_v31, %v505_v30  ;;  %v520_v38 = vld [vmem:[#allocation6 + $0x5a0] sm:$0xff]  ;;  %v506_v39 = vld [vmem:[#allocation6 + $0x530] sm:$0xff]  ;;  %v2967_v40 = vpack.c.bf16 %v523_v33, %v507_v32  ;;  %v537_v42 = vld [vmem:[#allocation6 + $0x628] sm:$0xff] }
  0xb3   : > { %2950 = vmatpush1.bf16.msra.mxu1 %v2949_v50  ;;  %2920 = vmatprep.subr.bf16.mxu0 %v2919_v51  ;;  %v522_v41 = vld [vmem:[#allocation6 + $0x5b0] sm:$0xff]  ;;  %v553_v43 = vld [vmem:[#allocation6 + $0x6a8] sm:$0xff]  ;;  %v539_v44 = vld [vmem:[#allocation6 + $0x638] sm:$0xff]  ;;  %v2937_v46 = vpack.c.bf16 %v520_v38, %v504_v37 }
  0xb4   : > { %2952 = vmatprep.subr.bf16.mxu1 %v2951_v55  ;;  %886 = vmatprep.mubr.f32.mxu0 %v3711_v0  ;;  %v555_v45 = vld [vmem:[#allocation6 + $0x6b8] sm:$0xff]  ;;  %v2969_v47 = vpack.c.bf16 %v522_v41, %v506_v39  ;;  %v2939_v49 = vpack.c.bf16 %v553_v43, %v537_v42  ;;  %v536_v50 = vld [vmem:[#allocation6 + $0x620] sm:$0xff]  ;;  %v538_v52 = vld [vmem:[#allocation6 + $0x630] sm:$0xff] }
  0xb5   : > { %957 = vmatprep.mubr.f32.mxu1 %v3711_v0  ;;  %v552_v51 = vld [vmem:[#allocation6 + $0x6a0] sm:$0xff]  ;;  %v2971_v53 = vpack.c.bf16 %v555_v45, %v539_v44  ;;  %v554_v54 = vld [vmem:[#allocation6 + $0x6b0] sm:$0xff]  ;;  %v569_v55 = vld [vmem:[#allocation6 + $0x728] sm:$0xff] }
  0xb6   : > { %2922 = vmatpush1.bf16.msra.mxu0 %v2921_v61  ;;  %v585_v56 = vld [vmem:[#allocation6 + $0x7a8] sm:$0xff]  ;;  %v571_v57 = vld [vmem:[#allocation6 + $0x738] sm:$0xff]  ;;  %v2941_v59 = vpack.c.bf16 %v552_v51, %v536_v50  ;;  %v2973_v60 = vpack.c.bf16 %v554_v54, %v538_v52  ;;  %v570_v1 = vld [vmem:[#allocation6 + $0x730] sm:$0xff] }
  0xb7   : > { %2954 = vmatpush1.bf16.msra.mxu1 %v2953_v62  ;;  %2924 = vmatprep.subr.bf16.mxu0 %v2923_v63  ;;  %v587_v58 = vld [vmem:[#allocation6 + $0x7b8] sm:$0xff]  ;;  %v2943_v61 = vpack.c.bf16 %v585_v56, %v569_v55  ;;  %v568_v62 = vld [vmem:[#allocation6 + $0x720] sm:$0xff]  ;;  %v586_v3 = vld [vmem:[#allocation6 + $0x7b0] sm:$0xff] }
  0xb8   : > { %2956 = vmatprep.subr.bf16.mxu1 %v2955_v4  ;;  %v584_v63 = vld [vmem:[#allocation6 + $0x7a0] sm:$0xff]  ;;  %v2975_v2 = vpack.c.bf16 %v587_v58, %v571_v57  ;;  %v349_v4 = vld [vmem:[#allocation6 + $0x48] sm:$0xff]  ;;  %v351_v6 = vld [vmem:[#allocation6 + $0x58] sm:$0xff]  ;;  %v2977_v9 = vpack.c.bf16 %v586_v3, %v570_v1 }
  0xb9   : > { %v365_v5 = vld [vmem:[#allocation6 + $0xc8] sm:$0xff]  ;;  %v367_v7 = vld [vmem:[#allocation6 + $0xd8] sm:$0xff]  ;;  %v2945_v8 = vpack.c.bf16 %v584_v63, %v568_v62  ;;  %v350_v13 = vld [vmem:[#allocation6 + $0x50] sm:$0xff] }
  0xba   : > { %2926 = vmatpush1.bf16.msra.mxu0 %v2925_v10  ;;  %v2979_v10 = vpack.c.bf16 %v365_v5, %v349_v4  ;;  %v3011_v14 = vpack.c.bf16 %v367_v7, %v351_v6  ;;  %v366_v15 = vld [vmem:[#allocation6 + $0xd0] sm:$0xff]  ;;  %v397_v17 = vld [vmem:[#allocation6 + $0x1c8] sm:$0xff]  ;;  %v383_v18 = vld [vmem:[#allocation6 + $0x158] sm:$0xff] }
  0xbb   : > { %2958 = vmatpush1.bf16.msra.mxu1 %v2957_v11  ;;  %2928 = vmatprep.subr.bf16.mxu0 %v2927_v12  ;;  %v348_v11 = vld [vmem:[#allocation6 + $0x40] sm:$0xff]  ;;  %v399_v19 = vld [vmem:[#allocation6 + $0x1d8] sm:$0xff]  ;;  %v3013_v21 = vpack.c.bf16 %v366_v15, %v350_v13  ;;  %v382_v25 = vld [vmem:[#allocation6 + $0x150] sm:$0xff] }
  0xbc   : > { %2960 = vmatprep.subr.bf16.mxu1 %v2959_v16  ;;  %v364_v12 = vld [vmem:[#allocation6 + $0xc0] sm:$0xff]  ;;  %v381_v16 = vld [vmem:[#allocation6 + $0x148] sm:$0xff]  ;;  %v3015_v26 = vpack.c.bf16 %v399_v19, %v383_v18  ;;  %v398_v27 = vld [vmem:[#allocation6 + $0x1d0] sm:$0xff] }
  0xbd   : > { %v2981_v20 = vpack.c.bf16 %v364_v12, %v348_v11  ;;  %v429_v29 = vld [vmem:[#allocation6 + $0x2c8] sm:$0xff]  ;;  %v415_v30 = vld [vmem:[#allocation6 + $0x258] sm:$0xff]  ;;  %v3017_v33 = vpack.c.bf16 %v398_v27, %v382_v25  ;;  %v414_v37 = vld [vmem:[#allocation6 + $0x250] sm:$0xff] }
  0xbe   : > { %2930 = vmatpush1.bf16.msra.mxu0 %v2929_v22  ;;  %v2983_v22 = vpack.c.bf16 %v397_v17, %v381_v16  ;;  %v431_v31 = vld [vmem:[#allocation6 + $0x2d8] sm:$0xff]  ;;  %v430_v39 = vld [vmem:[#allocation6 + $0x2d0] sm:$0xff]  ;;  %v461_v41 = vld [vmem:[#allocation6 + $0x3c8] sm:$0xff] }
  0xbf   : > { %2962 = vmatpush1.bf16.msra.mxu1 %v2961_v23  ;;  %2932 = vmatprep.subr.bf16.mxu0 %v2931_v24  ;;  %v380_v23 = vld [vmem:[#allocation6 + $0x140] sm:$0xff]  ;;  %v3019_v38 = vpack.c.bf16 %v431_v31, %v415_v30  ;;  %v447_v42 = vld [vmem:[#allocation6 + $0x358] sm:$0xff]  ;;  %v3021_v45 = vpack.c.bf16 %v430_v39, %v414_v37  ;;  %v446_v50 = vld [vmem:[#allocation6 + $0x350] sm:$0xff] }
  0xc0   : > { %2964 = vmatprep.subr.bf16.mxu1 %v2963_v28  ;;  %v396_v24 = vld [vmem:[#allocation6 + $0x1c0] sm:$0xff]  ;;  %v413_v28 = vld [vmem:[#allocation6 + $0x248] sm:$0xff]  ;;  %v463_v43 = vld [vmem:[#allocation6 + $0x3d8] sm:$0xff] }
  0xc1   : > { %v2985_v32 = vpack.c.bf16 %v396_v24, %v380_v23  ;;  %v3023_v51 = vpack.c.bf16 %v463_v43, %v447_v42  ;;  %v462_v52 = vld [vmem:[#allocation6 + $0x3d0] sm:$0xff]  ;;  %v493_v54 = vld [vmem:[#allocation6 + $0x4c8] sm:$0xff]  ;;  %v479_v55 = vld [vmem:[#allocation6 + $0x458] sm:$0xff] }
  0xc2   : > { %2934 = vmatpush1.bf16.msra.mxu0 %v2933_v34  ;;  %v2987_v34 = vpack.c.bf16 %v429_v29, %v413_v28  ;;  %v495_v56 = vld [vmem:[#allocation6 + $0x4d8] sm:$0xff]  ;;  %v3025_v58 = vpack.c.bf16 %v462_v52, %v446_v50  ;;  %v478_v62 = vld [vmem:[#allocation6 + $0x450] sm:$0xff]  ;;  %v525_v3 = vld [vmem:[#allocation6 + $0x5c8] sm:$0xff] }
  0xc3   : > { %2966 = vmatpush1.bf16.msra.mxu1 %v2965_v35  ;;  %2936 = vmatprep.subr.bf16.mxu0 %v2935_v36  ;;  %v412_v35 = vld [vmem:[#allocation6 + $0x240] sm:$0xff]  ;;  %v3027_v63 = vpack.c.bf16 %v495_v56, %v479_v55  ;;  %v494_v1 = vld [vmem:[#allocation6 + $0x4d0] sm:$0xff]  ;;  %v511_v4 = vld [vmem:[#allocation6 + $0x558] sm:$0xff] }
  0xc4   : > { %2968 = vmatprep.subr.bf16.mxu1 %v2967_v40  ;;  %v428_v36 = vld [vmem:[#allocation6 + $0x2c0] sm:$0xff]  ;;  %v445_v40 = vld [vmem:[#allocation6 + $0x348] sm:$0xff]  ;;  %v527_v5 = vld [vmem:[#allocation6 + $0x5d8] sm:$0xff]  ;;  %v3029_v7 = vpack.c.bf16 %v494_v1, %v478_v62 }
  0xc5   : > { %v2989_v44 = vpack.c.bf16 %v428_v36, %v412_v35  ;;  %v510_v11 = vld [vmem:[#allocation6 + $0x550] sm:$0xff]  ;;  %v3031_v12 = vpack.c.bf16 %v527_v5, %v511_v4  ;;  %v557_v15 = vld [vmem:[#allocation6 + $0x6c8] sm:$0xff]  ;;  %v543_v16 = vld [vmem:[#allocation6 + $0x658] sm:$0xff] }
  0xc6   : > { %2938 = vmatpush1.bf16.msra.mxu0 %v2937_v46  ;;  %v2991_v46 = vpack.c.bf16 %v461_v41, %v445_v40  ;;  %v526_v13 = vld [vmem:[#allocation6 + $0x5d0] sm:$0xff]  ;;  %v559_v17 = vld [vmem:[#allocation6 + $0x6d8] sm:$0xff]  ;;  %v589_v27 = vld [vmem:[#allocation6 + $0x7c8] sm:$0xff] }
  0xc7   : > { %2970 = vmatpush1.bf16.msra.mxu1 %v2969_v47  ;;  %2940 = vmatprep.subr.bf16.mxu0 %v2939_v49  ;;  %v444_v47 = vld [vmem:[#allocation6 + $0x340] sm:$0xff]  ;;  %v3033_v19 = vpack.c.bf16 %v526_v13, %v510_v11  ;;  %v542_v23 = vld [vmem:[#allocation6 + $0x650] sm:$0xff]  ;;  %v3035_v24 = vpack.c.bf16 %v559_v17, %v543_v16  ;;  %v575_v28 = vld [vmem:[#allocation6 + $0x758] sm:$0xff] }
  0xc8   : > { %2972 = vmatprep.subr.bf16.mxu1 %v2971_v53  ;;  %v460_v49 = vld [vmem:[#allocation6 + $0x3c0] sm:$0xff]  ;;  %v477_v53 = vld [vmem:[#allocation6 + $0x448] sm:$0xff]  ;;  %v558_v25 = vld [vmem:[#allocation6 + $0x6d0] sm:$0xff] }
  0xc9   : > { %v2993_v57 = vpack.c.bf16 %v460_v49, %v444_v47  ;;  %v591_v29 = vld [vmem:[#allocation6 + $0x7d8] sm:$0xff]  ;;  %v3037_v31 = vpack.c.bf16 %v558_v25, %v542_v23  ;;  %v574_v35 = vld [vmem:[#allocation6 + $0x750] sm:$0xff]  ;;  %v369_v39 = vld [vmem:[#allocation6 + $0xe8] sm:$0xff] }
  0xca   : > { %2942 = vmatpush1.bf16.msra.mxu0 %v2941_v59  ;;  %v2995_v59 = vpack.c.bf16 %v493_v54, %v477_v53  ;;  %v3039_v36 = vpack.c.bf16 %v591_v29, %v575_v28  ;;  %v590_v37 = vld [vmem:[#allocation6 + $0x7d0] sm:$0xff]  ;;  %v355_v40 = vld [vmem:[#allocation6 + $0x78] sm:$0xff]  ;;  %v401_v52 = vld [vmem:[#allocation6 + $0x1e8] sm:$0xff] }
  0xcb   : > { %2974 = vmatpush1.bf16.msra.mxu1 %v2973_v60  ;;  %2944 = vmatprep.subr.bf16.mxu0 %v2943_v61  ;;  %v476_v60 = vld [vmem:[#allocation6 + $0x440] sm:$0xff]  ;;  %v371_v41 = vld [vmem:[#allocation6 + $0xf8] sm:$0xff]  ;;  %v3041_v43 = vpack.c.bf16 %v590_v37, %v574_v35  ;;  %v354_v47 = vld [vmem:[#allocation6 + $0x70] sm:$0xff] }
  0xcc   : > { %2976 = vmatprep.subr.bf16.mxu1 %v2975_v2  ;;  %v492_v61 = vld [vmem:[#allocation6 + $0x4c0] sm:$0xff]  ;;  %v509_v2 = vld [vmem:[#allocation6 + $0x548] sm:$0xff]  ;;  %v3075_v49 = vpack.c.bf16 %v371_v41, %v355_v40  ;;  %v370_v50 = vld [vmem:[#allocation6 + $0xf0] sm:$0xff] }
  0xcd   : > { %v2997_v6 = vpack.c.bf16 %v492_v61, %v476_v60  ;;  %v387_v53 = vld [vmem:[#allocation6 + $0x178] sm:$0xff]  ;;  %v3077_v56 = vpack.c.bf16 %v370_v50, %v354_v47  ;;  %v386_v60 = vld [vmem:[#allocation6 + $0x170] sm:$0xff]  ;;  %v433_v1 = vld [vmem:[#allocation6 + $0x2e8] sm:$0xff] }
  0xce   : > { %2946 = vmatpush1.bf16.msra.mxu0 %v2945_v8  ;;  %v2999_v8 = vpack.c.bf16 %v525_v3, %v509_v2  ;;  %v403_v54 = vld [vmem:[#allocation6 + $0x1f8] sm:$0xff]  ;;  %v402_v62 = vld [vmem:[#allocation6 + $0x1f0] sm:$0xff]  ;;  %v465_v13 = vld [vmem:[#allocation6 + $0x3e8] sm:$0xff] }
  0xcf   : > { %2978 = vmatpush1.bf16.msra.mxu1 %v2977_v9  ;;  %2980 = vmatprep.subr.bf16.mxu0 %v2979_v10  ;;  %v508_v9 = vld [vmem:[#allocation6 + $0x540] sm:$0xff]  ;;  %v3079_v61 = vpack.c.bf16 %v403_v54, %v387_v53  ;;  %v419_v2 = vld [vmem:[#allocation6 + $0x278] sm:$0xff]  ;;  %v3081_v5 = vpack.c.bf16 %v402_v62, %v386_v60  ;;  %v434_v11 = vld [vmem:[#allocation6 + $0x2f0] sm:$0xff] }
  0xd0   : > { %3012 = vmatprep.subr.bf16.mxu1 %v3011_v14  ;;  %v524_v10 = vld [vmem:[#allocation6 + $0x5c0] sm:$0xff]  ;;  %v541_v14 = vld [vmem:[#allocation6 + $0x648] sm:$0xff]  ;;  %v435_v3 = vld [vmem:[#allocation6 + $0x2f8] sm:$0xff] }
  0xd1   : > { %887 = vmatmul.mubr.f32.vlgmr.msra.gmra.mrb[2].mxu0 %v3980_v48  ;;  %v3001_v18 = vpack.c.bf16 %v524_v10, %v508_v9  ;;  %v418_v9 = vld [vmem:[#allocation6 + $0x270] sm:$0xff]  ;;  %v3083_v10 = vpack.c.bf16 %v435_v3, %v419_v2  ;;  %v497_v25 = vld [vmem:[#allocation6 + $0x4e8] sm:$0xff]  ;;  %v515_v37 = vld [vmem:[#allocation6 + $0x578] sm:$0xff] }
  0xd2   : > { %958 = vmatmul.mubr.f32.vlgmr.msra.gmra.mrb[2].mxu1 %v3980_v48  ;;  %2982 = vmatpush1.bf16.msra.mxu0 %v2981_v20  ;;  %v3003_v20 = vpack.c.bf16 %v557_v15, %v541_v14  ;;  %v451_v14 = vld [vmem:[#allocation6 + $0x378] sm:$0xff]  ;;  %v3085_v17 = vpack.c.bf16 %v434_v11, %v418_v9  ;;  %v466_v23 = vld [vmem:[#allocation6 + $0x3f0] sm:$0xff]  ;;  %v513_v35 = vld [vmem:[#allocation6 + $0x568] sm:$0xff] }
  0xd3   : > { %3014 = vmatpush1.bf16.msra.mxu1 %v3013_v21  ;;  %2984 = vmatprep.subr.bf16.mxu0 %v2983_v22  ;;  %v540_v21 = vld [vmem:[#allocation6 + $0x640] sm:$0xff]  ;;  %v467_v15 = vld [vmem:[#allocation6 + $0x3f8] sm:$0xff]  ;;  %v545_v47 = vld [vmem:[#allocation6 + $0x668] sm:$0xff] }
  0xd4   : > { %3016 = vmatprep.subr.bf16.mxu1 %v3015_v26  ;;  %1028 = vmatprep.mubr.f32.mxu0 %v3711_v0  ;;  %v556_v22 = vld [vmem:[#allocation6 + $0x6c0] sm:$0xff]  ;;  %v573_v26 = vld [vmem:[#allocation6 + $0x748] sm:$0xff]  ;;  %v547_v50 = vld [vmem:[#allocation6 + $0x678] sm:$0xff] }
  0xd5   : > { %1099 = vmatprep.mubr.f32.mxu1 %v3711_v0  ;;  %v3005_v30 = vpack.c.bf16 %v556_v22, %v540_v21  ;;  %v450_v21 = vld [vmem:[#allocation6 + $0x370] sm:$0xff]  ;;  %v3087_v22 = vpack.c.bf16 %v467_v15, %v451_v14  ;;  %v577_v60 = vld [vmem:[#allocation6 + $0x768] sm:$0xff]  ;;  %v579_v62 = vld [vmem:[#allocation6 + $0x778] sm:$0xff] }
  0xd6   : > { %2986 = vmatpush1.bf16.msra.mxu0 %v2985_v32  ;;  %v3007_v32 = vpack.c.bf16 %v589_v27, %v573_v26  ;;  %v483_v26 = vld [vmem:[#allocation6 + $0x478] sm:$0xff]  ;;  %v1505_v11 = vld [vmem:[#allocation9 + $0x80] sm:$0xff] }
  0xd7   : > { %3018 = vmatpush1.bf16.msra.mxu1 %v3017_v33  ;;  %2988 = vmatprep.subr.bf16.mxu0 %v2987_v34  ;;  %v572_v33 = vld [vmem:[#allocation6 + $0x740] sm:$0xff]  ;;  %v499_v27 = vld [vmem:[#allocation6 + $0x4f8] sm:$0xff] }
  0xd8   : > { %3020 = vmatprep.subr.bf16.mxu1 %v3019_v38  ;;  %v588_v34 = vld [vmem:[#allocation6 + $0x7c0] sm:$0xff]  ;;  %v353_v38 = vld [vmem:[#allocation6 + $0x68] sm:$0xff]  ;;  %v1538_v15 = vld [vmem:[#allocation9 + $0x188] sm:$0xff] }
  0xd9   : > { %v3009_v42 = vpack.c.bf16 %v588_v34, %v572_v33  ;;  %v3091_v33 = vpack.c.bf16 %v499_v27, %v483_v26  ;;  %v498_v34 = vld [vmem:[#allocation6 + $0x4f0] sm:$0xff]  ;;  %v1540_v26 = vld [vmem:[#allocation9 + $0x198] sm:$0xff]  ;;  %v1491_v27 = vld [vmem:[#allocation9 + $0x10] sm:$0xff] }
  0xda   : > { %2990 = vmatpush1.bf16.msra.mxu0 %v2989_v44  ;;  %v3043_v44 = vpack.c.bf16 %v369_v39, %v353_v38  ;;  %v531_v38 = vld [vmem:[#allocation6 + $0x5f8] sm:$0xff] }
  0xdb   : > { %3022 = vmatpush1.bf16.msra.mxu1 %v3021_v45  ;;  %2992 = vmatprep.subr.bf16.mxu0 %v2991_v46  ;;  %v352_v45 = vld [vmem:[#allocation6 + $0x60] sm:$0xff] }
  0xdc   : > { %3024 = vmatprep.subr.bf16.mxu1 %v3023_v51  ;;  %v368_v46 = vld [vmem:[#allocation6 + $0xe0] sm:$0xff]  ;;  %v385_v51 = vld [vmem:[#allocation6 + $0x168] sm:$0xff] }
  0xdd   : > { %v3045_v55 = vpack.c.bf16 %v368_v46, %v352_v45  ;;  %v3095_v45 = vpack.c.bf16 %v531_v38, %v515_v37  ;;  %v530_v46 = vld [vmem:[#allocation6 + $0x5f0] sm:$0xff]  ;;  %v1542_v37 = vld [vmem:[#allocation9 + $0x1a8] sm:$0xff] }
  0xde   : > { %2994 = vmatpush1.bf16.msra.mxu0 %v2993_v57  ;;  %v3047_v57 = vpack.c.bf16 %v401_v52, %v385_v51  ;;  %v563_v51 = vld [vmem:[#allocation6 + $0x6f8] sm:$0xff]  ;;  %v1493_v38 = vld [vmem:[#allocation9 + $0x20] sm:$0xff] }
  0xdf   : > { %3026 = vmatpush1.bf16.msra.mxu1 %v3025_v58  ;;  %2996 = vmatprep.subr.bf16.mxu0 %v2995_v59  ;;  %v384_v58 = vld [vmem:[#allocation6 + $0x160] sm:$0xff] }
  0xe0   : > { %3028 = vmatprep.subr.bf16.mxu1 %v3027_v63  ;;  %v400_v59 = vld [vmem:[#allocation6 + $0x1e0] sm:$0xff]  ;;  %v417_v63 = vld [vmem:[#allocation6 + $0x268] sm:$0xff] }
  0xe1   : > { %v3049_v4 = vpack.c.bf16 %v400_v59, %v384_v58  ;;  %v3099_v58 = vpack.c.bf16 %v563_v51, %v547_v50  ;;  %v562_v59 = vld [vmem:[#allocation6 + $0x6f0] sm:$0xff]  ;;  %v1544_v50 = vld [vmem:[#allocation9 + $0x1b8] sm:$0xff]  ;;  %v1495_v51 = vld [vmem:[#allocation9 + $0x30] sm:$0xff] }
  0xe2   : > { %2998 = vmatpush1.bf16.msra.mxu0 %v2997_v6  ;;  %v3051_v6 = vpack.c.bf16 %v433_v1, %v417_v63  ;;  %v595_v63 = vld [vmem:[#allocation6 + $0x7f8] sm:$0xff] }
  0xe3   : > { %3030 = vmatpush1.bf16.msra.mxu1 %v3029_v7  ;;  %3000 = vmatprep.subr.bf16.mxu0 %v2999_v8  ;;  %v416_v7 = vld [vmem:[#allocation6 + $0x260] sm:$0xff] }
  0xe4   : > { %3032 = vmatprep.subr.bf16.mxu1 %v3031_v12  ;;  %v432_v8 = vld [vmem:[#allocation6 + $0x2e0] sm:$0xff]  ;;  %v449_v12 = vld [vmem:[#allocation6 + $0x368] sm:$0xff] }
  0xe5   : > { %v3053_v16 = vpack.c.bf16 %v432_v8, %v416_v7  ;;  %v578_v7 = vld [vmem:[#allocation6 + $0x770] sm:$0xff] }
  0xe6   : > { %3002 = vmatpush1.bf16.msra.mxu0 %v3001_v18  ;;  %v3055_v18 = vpack.c.bf16 %v465_v13, %v449_v12  ;;  %v594_v8 = vld [vmem:[#allocation6 + $0x7f0] sm:$0xff]  ;;  %v1506_v12 = vld [vmem:[#allocation9 + $0x88] sm:$0xff] }
  0xe7   : > { %3034 = vmatpush1.bf16.msra.mxu1 %v3033_v19  ;;  %3004 = vmatprep.subr.bf16.mxu0 %v3003_v20  ;;  %v448_v19 = vld [vmem:[#allocation6 + $0x360] sm:$0xff]  ;;  %v1537_v13 = vld [vmem:[#allocation9 + $0x180] sm:$0xff]  ;;  %v3107_v14 = vpack.c.bf16 %v1506_v12, %v1505_v11  ;;  %v1548_v11 = vld [vmem:[#allocation9 + $0x1d8] sm:$0xff] }
  0xe8   : > { %3036 = vmatprep.subr.bf16.mxu1 %v3035_v24  ;;  %v464_v20 = vld [vmem:[#allocation6 + $0x3e0] sm:$0xff]  ;;  %v481_v24 = vld [vmem:[#allocation6 + $0x468] sm:$0xff] }
  0xe9   : > { %v3057_v28 = vpack.c.bf16 %v464_v20, %v448_v19  ;;  %v3059_v29 = vpack.c.bf16 %v497_v25, %v481_v24  ;;  %v1521_v20 = vld [vmem:[#allocation9 + $0x100] sm:$0xff]  ;;  %v1508_v24 = vld [vmem:[#allocation9 + $0x98] sm:$0xff]  ;;  %v1539_v25 = vld [vmem:[#allocation9 + $0x190] sm:$0xff] }
  0xea   : > { %3006 = vmatpush1.bf16.msra.mxu0 %v3005_v30  ;;  %v480_v30 = vld [vmem:[#allocation6 + $0x460] sm:$0xff] }
  0xeb   : > { %3038 = vmatpush1.bf16.msra.mxu1 %v3037_v31  ;;  %3008 = vmatprep.subr.bf16.mxu0 %v3007_v32  ;;  %v496_v31 = vld [vmem:[#allocation6 + $0x4e0] sm:$0xff]  ;;  %v482_v32 = vld [vmem:[#allocation6 + $0x470] sm:$0xff] }
  0xec   : > { %3040 = vmatprep.subr.bf16.mxu1 %v3039_v36  ;;  %v529_v36 = vld [vmem:[#allocation6 + $0x5e8] sm:$0xff]  ;;  %v3061_v39 = vpack.c.bf16 %v496_v31, %v480_v30  ;;  %v3093_v40 = vpack.c.bf16 %v498_v34, %v482_v32  ;;  %v1523_v30 = vld [vmem:[#allocation9 + $0x110] sm:$0xff]  ;;  %v1510_v34 = vld [vmem:[#allocation9 + $0xa8] sm:$0xff] }
  0xed   : > { %v3063_v41 = vpack.c.bf16 %v529_v36, %v513_v35  ;;  %v1524_v31 = vld [vmem:[#allocation9 + $0x118] sm:$0xff]  ;;  %v1541_v35 = vld [vmem:[#allocation9 + $0x1a0] sm:$0xff]  ;;  %v1499_v12 = vld [vmem:[#allocation9 + $0x50] sm:$0xff] }
  0xee   : > { %3010 = vmatpush1.bf16.msra.mxu0 %v3009_v42  ;;  %v512_v42 = vld [vmem:[#allocation6 + $0x560] sm:$0xff]  ;;  %v3145_v32 = vpack.c.bf16 %v1524_v31, %v1523_v30  ;;  %v1520_v30 = vld [vmem:[#allocation9 + $0xf8] sm:$0xff] }
  0xef   : > { %3042 = vmatpush1.bf16.msra.mxu1 %v3041_v43  ;;  %3044 = vmatprep.subr.bf16.mxu0 %v3043_v44  ;;  %v528_v43 = vld [vmem:[#allocation6 + $0x5e0] sm:$0xff]  ;;  %v514_v44 = vld [vmem:[#allocation6 + $0x570] sm:$0xff] }
  0xf0   : > { %3076 = vmatprep.subr.bf16.mxu1 %v3075_v49  ;;  %v561_v49 = vld [vmem:[#allocation6 + $0x6e8] sm:$0xff]  ;;  %v3065_v52 = vpack.c.bf16 %v528_v43, %v512_v42  ;;  %v3097_v53 = vpack.c.bf16 %v530_v46, %v514_v44  ;;  %v1525_v42 = vld [vmem:[#allocation9 + $0x120] sm:$0xff]  ;;  %v1526_v43 = vld [vmem:[#allocation9 + $0x128] sm:$0xff] }
  0xf1   : > { %1029 = vmatmul.mubr.f32.vlgmr.msra.gmra.mrb[4].mxu0 %v3980_v48  ;;  %v3067_v54 = vpack.c.bf16 %v561_v49, %v545_v47  ;;  %v3149_v44 = vpack.c.bf16 %v1526_v43, %v1525_v42  ;;  %v1512_v46 = vld [vmem:[#allocation9 + $0xb8] sm:$0xff]  ;;  %v1543_v47 = vld [vmem:[#allocation9 + $0x1b0] sm:$0xff]  ;;  %v1570_v42 = vld [vmem:[#allocation9 + $0x288] sm:$0xff] }
  0xf2   : > { %1100 = vmatmul.mubr.f32.vlgmr.msra.gmra.mrb[4].mxu1 %v3980_v48  ;;  %3046 = vmatpush1.bf16.msra.mxu0 %v3045_v55  ;;  %v544_v55 = vld [vmem:[#allocation6 + $0x660] sm:$0xff]  ;;  %v1601_v43 = vld [vmem:[#allocation9 + $0x380] sm:$0xff] }
  0xf3   : > { %3078 = vmatpush1.bf16.msra.mxu1 %v3077_v56  ;;  %3048 = vmatprep.subr.bf16.mxu0 %v3047_v57  ;;  %v560_v56 = vld [vmem:[#allocation6 + $0x6e0] sm:$0xff]  ;;  %v546_v57 = vld [vmem:[#allocation6 + $0x670] sm:$0xff] }
  0xf4   : > { %3080 = vmatprep.subr.bf16.mxu1 %v3079_v61  ;;  %1170 = vmatprep.mubr.f32.mxu0 %v3711_v0  ;;  %v593_v61 = vld [vmem:[#allocation6 + $0x7e8] sm:$0xff]  ;;  %v3069_v1 = vpack.c.bf16 %v560_v56, %v544_v55  ;;  %v3101_v2 = vpack.c.bf16 %v562_v59, %v546_v57  ;;  %v1527_v55 = vld [vmem:[#allocation9 + $0x130] sm:$0xff]  ;;  %v1514_v59 = vld [vmem:[#allocation9 + $0xc8] sm:$0xff] }
  0xf5   : > { %1241 = vmatprep.mubr.f32.mxu1 %v3711_v0  ;;  %v3089_v0 = vpack.c.bf16 %v466_v23, %v450_v21  ;;  %v3071_v3 = vpack.c.bf16 %v593_v61, %v577_v60  ;;  %v1522_v21 = vld [vmem:[#allocation9 + $0x108] sm:$0xff]  ;;  %v1507_v23 = vld [vmem:[#allocation9 + $0x90] sm:$0xff]  ;;  %v1528_v56 = vld [vmem:[#allocation9 + $0x138] sm:$0xff] }
  0xf6   : > { %3050 = vmatpush1.bf16.msra.mxu0 %v3049_v4  ;;  %v576_v4 = vld [vmem:[#allocation6 + $0x760] sm:$0xff]  ;;  %v3153_v57 = vpack.c.bf16 %v1528_v56, %v1527_v55  ;;  %v1545_v60 = vld [vmem:[#allocation9 + $0x1c0] sm:$0xff] }
  0xf7   : > { %3082 = vmatpush1.bf16.msra.mxu1 %v3081_v5  ;;  %3052 = vmatprep.subr.bf16.mxu0 %v3051_v6  ;;  %v592_v5 = vld [vmem:[#allocation6 + $0x7e0] sm:$0xff]  ;;  %v3103_v6 = vpack.c.bf16 %v595_v63, %v579_v62  ;;  %v1546_v62 = vld [vmem:[#allocation9 + $0x1c8] sm:$0xff]  ;;  %v1497_v63 = vld [vmem:[#allocation9 + $0x40] sm:$0xff] }
  0xf8   : > { %3084 = vmatprep.subr.bf16.mxu1 %v3083_v10  ;;  %v3073_v9 = vpack.c.bf16 %v592_v5, %v576_v4  ;;  %v3105_v10 = vpack.c.bf16 %v594_v8, %v578_v7  ;;  %v1529_v4 = vld [vmem:[#allocation9 + $0x140] sm:$0xff]  ;;  %v1530_v5 = vld [vmem:[#allocation9 + $0x148] sm:$0xff]  ;;  %v1515_v7 = vld [vmem:[#allocation9 + $0xd0] sm:$0xff] }
  0xf9   : > { %v1516_v8 = vld [vmem:[#allocation9 + $0xd8] sm:$0xff]  ;;  %v1551_v31 = vld [vmem:[#allocation9 + $0x1f0] sm:$0xff] }
  0xfa   : > { %3054 = vmatpush1.bf16.msra.mxu0 %v3053_v16  ;;  %v1489_v16 = vld [vmem:[#allocation9] sm:$0xff] }
  0xfb   : > { %3086 = vmatpush1.bf16.msra.mxu1 %v3085_v17  ;;  %3056 = vmatprep.subr.bf16.mxu0 %v3055_v18  ;;  %v1490_v17 = vld [vmem:[#allocation9 + $0x8] sm:$0xff]  ;;  %v3139_v18 = vpack.c.bf16 %v1538_v15, %v1537_v13  ;;  %v1500_v13 = vld [vmem:[#allocation9 + $0x58] sm:$0xff] }
  0xfc   : > { %3088 = vmatprep.subr.bf16.mxu1 %v3087_v22  ;;  %v3109_v19 = vpack.c.bf16 %v1490_v17, %v1489_v16  ;;  %v3141_v22 = vpack.c.bf16 %v1522_v21, %v1521_v20  ;;  %v3129_v15 = vpack.c.bf16 %v1500_v13, %v1499_v12  ;;  %v1531_v16 = vld [vmem:[#allocation9 + $0x150] sm:$0xff]  ;;  %v1532_v17 = vld [vmem:[#allocation9 + $0x158] sm:$0xff]  ;;  %v1518_v20 = vld [vmem:[#allocation9 + $0xe8] sm:$0xff] }
  0xfd   : > { %v1549_v21 = vld [vmem:[#allocation9 + $0x1e0] sm:$0xff] }
  0xfe   : > { %3058 = vmatpush1.bf16.msra.mxu0 %v3057_v28  ;;  %v1492_v28 = vld [vmem:[#allocation9 + $0x18] sm:$0xff] }
  0xff   : > { %3090 = vmatpush1.bf16.msra.mxu1 %v3089_v0  ;;  %3060 = vmatprep.subr.bf16.mxu0 %v3059_v29  ;;  %v3143_v0 = vpack.c.bf16 %v1540_v26, %v1539_v25  ;;  %v3113_v29 = vpack.c.bf16 %v1492_v28, %v1491_v27  ;;  %v1502_v25 = vld [vmem:[#allocation9 + $0x68] sm:$0xff]  ;;  %v1533_v27 = vld [vmem:[#allocation9 + $0x160] sm:$0xff] }
 0x100   : > { %3092 = vmatprep.subr.bf16.mxu1 %v3091_v33  ;;  %v1509_v33 = vld [vmem:[#allocation9 + $0xa0] sm:$0xff]  ;;  %v1534_v28 = vld [vmem:[#allocation9 + $0x168] sm:$0xff] }
 0x101   : > { %v3115_v36 = vpack.c.bf16 %v1510_v34, %v1509_v33  ;;  %v1552_v33 = vld [vmem:[#allocation9 + $0x1f8] sm:$0xff]  ;;  %v1503_v34 = vld [vmem:[#allocation9 + $0x70] sm:$0xff] }
 0x102   : > { %3062 = vmatpush1.bf16.msra.mxu0 %v3061_v39  ;;  %v1494_v39 = vld [vmem:[#allocation9 + $0x28] sm:$0xff] }
 0x103   : > { %3094 = vmatpush1.bf16.msra.mxu1 %v3093_v40  ;;  %3064 = vmatprep.subr.bf16.mxu0 %v3063_v41  ;;  %v3147_v40 = vpack.c.bf16 %v1542_v37, %v1541_v35  ;;  %v3117_v41 = vpack.c.bf16 %v1494_v39, %v1493_v38  ;;  %v1504_v35 = vld [vmem:[#allocation9 + $0x78] sm:$0xff]  ;;  %v1535_v38 = vld [vmem:[#allocation9 + $0x170] sm:$0xff] }
 0x104   : > { %3096 = vmatprep.subr.bf16.mxu1 %v3095_v45  ;;  %v1511_v45 = vld [vmem:[#allocation9 + $0xb0] sm:$0xff]  ;;  %v3137_v37 = vpack.c.bf16 %v1504_v35, %v1503_v34  ;;  %v1536_v39 = vld [vmem:[#allocation9 + $0x178] sm:$0xff] }
 0x105   : > { %v3119_v49 = vpack.c.bf16 %v1512_v46, %v1511_v45  ;;  %v1602_v45 = vld [vmem:[#allocation9 + $0x388] sm:$0xff] }
 0x106   : > { %3066 = vmatpush1.bf16.msra.mxu0 %v3065_v52  ;;  %v1496_v52 = vld [vmem:[#allocation9 + $0x38] sm:$0xff]  ;;  %v3203_v46 = vpack.c.bf16 %v1602_v45, %v1601_v43 }
 0x107   : > { %3098 = vmatpush1.bf16.msra.mxu1 %v3097_v53  ;;  %3068 = vmatprep.subr.bf16.mxu0 %v3067_v54  ;;  %v3151_v53 = vpack.c.bf16 %v1544_v50, %v1543_v47  ;;  %v3121_v54 = vpack.c.bf16 %v1496_v52, %v1495_v51  ;;  %v600_v47 = vlaneseq  ;;  %v3998_v51 = vld [vmem:[#allocation8] sm:$0xff] }
 0x108   : > { %3100 = vmatprep.subr.bf16.mxu1 %v3099_v58  ;;  %v1513_v58 = vld [vmem:[#allocation9 + $0xc0] sm:$0xff] }
 0x109   : > { %v3123_v61 = vpack.c.bf16 %v1514_v59, %v1513_v58 }
 0x10a   : > { %3070 = vmatpush1.bf16.msra.mxu0 %v3069_v1  ;;  %v1498_v1 = vld [vmem:[#allocation9 + $0x48] sm:$0xff] }
 0x10b   : > { %3102 = vmatpush1.bf16.msra.mxu1 %v3101_v2  ;;  %3072 = vmatprep.subr.bf16.mxu0 %v3071_v3  ;;  %v3155_v2 = vpack.c.bf16 %v1546_v62, %v1545_v60  ;;  %v3125_v3 = vpack.c.bf16 %v1498_v1, %v1497_v63 }
 0x10c   : > { %3104 = vmatprep.subr.bf16.mxu1 %v3103_v6  ;;  %v3157_v6 = vpack.c.bf16 %v1530_v5, %v1529_v4 }
 0x10e   : > { %3074 = vmatpush1.bf16.msra.mxu0 %v3073_v9  ;;  %v1547_v9 = vld [vmem:[#allocation9 + $0x1d0] sm:$0xff] }
 0x10f   : > { %3106 = vmatpush1.bf16.msra.mxu1 %v3105_v10  ;;  %3108 = vmatprep.subr.bf16.mxu0 %v3107_v14  ;;  %v3127_v10 = vpack.c.bf16 %v1516_v8, %v1515_v7  ;;  %v3159_v14 = vpack.c.bf16 %v1548_v11, %v1547_v9 }
 0x110   : > { %3140 = vmatprep.subr.bf16.mxu1 %v3139_v18  ;;  %v3161_v18 = vpack.c.bf16 %v1532_v17, %v1531_v16 }
 0x111   : > { %1171 = vmatmul.mubr.f32.vlgmr.msra.gmra.mrb[6].mxu0 %v3980_v48 }
 0x112   : > { %1242 = vmatmul.mubr.f32.vlgmr.msra.gmra.mrb[6].mxu1 %v3980_v48  ;;  %3110 = vmatpush3.bf16.msra.mxu0 %v3109_v19  ;;  %v3111_v48 = vpack.c.bf16 %v1508_v24, %v1507_v23  ;;  %v1517_v19 = vld [vmem:[#allocation9 + $0xe0] sm:$0xff]  ;;  %v1550_v23 = vld [vmem:[#allocation9 + $0x1e8] sm:$0xff] }
 0x113   : > { %3142 = vmatpush3.bf16.msra.mxu1 %v3141_v22  ;;  %v3131_v22 = vpack.c.bf16 %v1518_v20, %v1517_v19  ;;  %v1501_v24 = vld [vmem:[#allocation9 + $0x60] sm:$0xff] }
 0x114   : > { %3112 = vmatprep.subr.bf16.mxu0 %v3111_v48  ;;  %3144 = vmatprep.subr.bf16.mxu1 %v3143_v0  ;;  %v3163_v48 = vpack.c.bf16 %v1550_v23, %v1549_v21  ;;  %v3133_v26 = vpack.c.bf16 %v1502_v25, %v1501_v24  ;;  %v3165_v0 = vpack.c.bf16 %v1534_v28, %v1533_v27 }
 0x116   : > { %3114 = vmatpush3.bf16.msra.mxu0 %v3113_v29  ;;  %v1519_v29 = vld [vmem:[#allocation9 + $0xf0] sm:$0xff] }
 0x117   : > { %3146 = vmatpush3.bf16.msra.mxu1 %v3145_v32  ;;  %3116 = vmatprep.subr.bf16.mxu0 %v3115_v36  ;;  %v3135_v32 = vpack.c.bf16 %v1520_v30, %v1519_v29  ;;  %v3167_v36 = vpack.c.bf16 %v1552_v33, %v1551_v31 }
 0x118   : > { %3148 = vmatprep.subr.bf16.mxu1 %v3147_v40  ;;  %v3169_v40 = vpack.c.bf16 %v1536_v39, %v1535_v38 }
 0x11a   : > { %3118 = vmatpush3.bf16.msra.mxu0 %v3117_v41  ;;  %v1569_v41 = vld [vmem:[#allocation9 + $0x280] sm:$0xff] }
 0x11b   : > { %3150 = vmatpush3.bf16.msra.mxu1 %v3149_v44  ;;  %3120 = vmatprep.subr.bf16.mxu0 %v3119_v49  ;;  %v3171_v44 = vpack.c.bf16 %v1570_v42, %v1569_v41  ;;  %v601_v49 = vshrl.u32 %v600_v47, 7 }
 0x11c   : > { %3152 = vmatprep.subr.bf16.mxu1 %v3151_v53 }
 0x11d   : > { %v3996_v50 = vsub.s32 0, %v601_v49  ;;  %v4000_v52 = vsub.s32 2, %v601_v49  ;;  %v4002_v53 = vsub.s32 1, %v601_v49  ;;  %v4018_v39 = vsub.s32 4, %v601_v49 }
 0x11e   : > { %3122 = vmatpush3.bf16.msra.mxu0 %v3121_v54  ;;  %v4004_v54 = vsub.s32 3, %v601_v49  ;;  %v4022_v41 = vsub.s32 5, %v601_v49  ;;  %v4024_v42 = vsub.s32 7, %v601_v49 }
 0x11f   : > { %3154 = vmatpush3.bf16.msra.mxu1 %v3153_v57  ;;  %3124 = vmatprep.subr.bf16.mxu0 %v3123_v61  ;;  %v603_v55 = vrot.slane %v3998_v51, %v3996_v50  ;;  %v611_v56 = vrot.slane %v3998_v51, %v4000_v52  ;;  %v607_v57 = vrot.slane %v3998_v51, %v4002_v53 }
 0x120   : > { %3156 = vmatprep.subr.bf16.mxu1 %v3155_v2  ;;  %v615_v58 = vrot.slane %v3998_v51, %v4004_v54  ;;  %v619_v43 = vrot.slane %v3998_v51, %v4018_v39  ;;  %v623_v45 = vrot.slane %v3998_v51, %v4022_v41 }
 0x122   : > { %3126 = vmatpush3.bf16.msra.mxu0 %v3125_v3 }
 0x123   : > { %3158 = vmatpush3.bf16.msra.mxu1 %v3157_v6  ;;  %3128 = vmatprep.subr.bf16.mxu0 %v3127_v10 }
 0x124   : > { %3160 = vmatprep.subr.bf16.mxu1 %v3159_v14 }
 0x126   : > { %3130 = vmatpush3.bf16.msra.mxu0 %v3129_v15  ;;  %v3712_v15 = vmov 1966171168  }
 0x127   : > { %3162 = vmatpush3.bf16.msra.mxu1 %v3161_v18  ;;  %3132 = vmatprep.subr.bf16.mxu0 %v3131_v22  ;;  %v1383_v16 = vunpack.c.l.s4 %v3712_v15 }
 0x128   : > { %3164 = vmatprep.subr.bf16.mxu1 %v3163_v48 }
 0x129   : > { %v1384_v25 = vunpack.c.0.s8 %v1383_v16 }
 0x12a   : > { %3134 = vmatpush3.bf16.msra.mxu0 %v3133_v26 }
 0x12b   : > { %3166 = vmatpush3.bf16.msra.mxu1 %v3165_v0  ;;  %3136 = vmatprep.subr.bf16.mxu0 %v3135_v32  ;;  %v4014_v32 = vsub.s32 %v1384_v25, %v601_v49 }
 0x12c   : > { %3168 = vmatprep.subr.bf16.mxu1 %v3167_v36 }
 0x12e   : > { %3138 = vmatpush3.bf16.msra.mxu0 %v3137_v37 }
 0x12f   : > { %3170 = vmatpush3.bf16.msra.mxu1 %v3169_v40  ;;  %3172 = vmatprep.subr.bf16.mxu0 %v3171_v44  ;;  %v4020_v40 = vsub.s32 6, %v601_v49 }
 0x130   : > { %3204 = vmatprep.subr.bf16.mxu1 %v3203_v46  ;;  %v631_v46 = vrot.slane %v3998_v51, %v4024_v42 }
 0x131   : > { %v627_v44 = vrot.slane %v3998_v51, %v4020_v40 }
 0x184   : > { %v746_v59 = vpop.f32.mrb[0].mxu0 }
 0x185   : > { %v747_v60 = vadd.f32 %v746_v59, %v603_v55  ;;  %v817_v61 = vpop.f32.mrb[0].mxu1  ;;  %v748_v62 = vpop.f32.mrb[1].mxu0 }
 0x186   : > { %v818_v63 = vadd.f32 %v817_v61, %v611_v56  ;;  %v749_v1 = vadd.f32 %v748_v62, %v607_v57  ;;  %v819_v2 = vpop.f32.mrb[1].mxu1 }
 0x187   : > { %v1248_v3 = vmax.f32 %v747_v60, 0.0  ;;  %v820_v4 = vadd.f32 %v819_v2, %v615_v58 }
 0x188   : > { %v1250_v5 = vmax.f32 %v818_v63, 0.0  ;;  %v1249_v6 = vmax.f32 %v749_v1, 0.0 }
 0x189   : > { %v1266_v7 = vrot.slane %v1248_v3, 4  ;;  %v1251_v8 = vmax.f32 %v820_v4, 0.0 }
 0x18a   : > { %v1278_v9 = vrot.slane %v1250_v5, 4  ;;  %v1272_v10 = vrot.slane %v1249_v6, 4 }
 0x18b   : > { %v1267_v11 = vadd.f32 %v1266_v7, %v1248_v3  ;;  %v1284_v12 = vrot.slane %v1251_v8, 4 }
 0x18c   : > { %v1279_v13 = vadd.f32 %v1278_v9, %v1250_v5  ;;  %v1273_v14 = vadd.f32 %v1272_v10, %v1249_v6 }
 0x18d   : > { %v1268_v17 = vrot.slane %v1267_v11, 2  ;;  %v1285_v18 = vadd.f32 %v1284_v12, %v1251_v8 }
 0x18e   : > { %v1280_v19 = vrot.slane %v1279_v13, 2  ;;  %v1274_v20 = vrot.slane %v1273_v14, 2 }
 0x18f   : > { %v1269_v21 = vadd.f32 %v1268_v17, %v1267_v11  ;;  %v1286_v22 = vrot.slane %v1285_v18, 2 }
 0x190   : > { %v1281_v23 = vadd.f32 %v1280_v19, %v1279_v13  ;;  %v1275_v24 = vadd.f32 %v1274_v20, %v1273_v14 }
 0x191   : > { %v1270_v48 = vrot.slane %v1269_v21, 1  ;;  %v1287_v26 = vadd.f32 %v1286_v22, %v1285_v18 }
 0x192   : > { %v1282_v27 = vrot.slane %v1281_v23, 1  ;;  %v1276_v28 = vrot.slane %v1275_v24, 1 }
 0x193   : > { %v1271_v0 = vadd.f32 %v1270_v48, %v1269_v21  ;;  %v1288_v29 = vrot.slane %v1287_v26, 1 }
 0x194   : > { %v1283_v30 = vadd.f32 %v1282_v27, %v1281_v23  ;;  %v1277_v31 = vadd.f32 %v1276_v28, %v1275_v24 }
 0x195   : > { %v1289_v33 = vadd.f32 %v1288_v29, %v1287_v26 }
 0x196   : > { %v1378_v34 = vcombine.low %v1271_v0, %v1277_v31  ;;  %v1553_v31 = vld [vmem:[#allocation9 + $0x200] sm:$0xff] }
 0x197   : > { %v1379_v35 = vcombine.low %v1283_v30, %v1289_v33  ;;  %v4038_v30 = vld [vmem:[#allocation8 + $0x8] sm:$0xff] }
 0x198   : > { %v1388_v36 = vrot.slane %v1378_v34, %v4014_v32  ;;  %v1554_v34 = vld [vmem:[#allocation9 + $0x208] sm:$0xff] }
 0x199   : > { %v1395_v37 = vrot.slane %v1379_v35, %v4014_v32  ;;  %v1585_v35 = vld [vmem:[#allocation9 + $0x300] sm:$0xff] }
 0x19b   : > { %v1410_v38 = vcombine.low %v1388_v36, %v1395_v37  ;;  %v1586_v36 = vld [vmem:[#allocation9 + $0x308] sm:$0xff] }
 0x19d   : > { %v1418_v0 = vrot.slane %v1410_v38, %v4014_v32  ;;  %v639_v38 = vrot.slane %v4038_v30, %v4002_v53 }
 0x1a4   : > { %v888_v47 = vpop.f32.mrb[2].mxu0 }
 0x1a5   : > { %v889_v55 = vadd.f32 %v888_v47, %v619_v43  ;;  %v959_v56 = vpop.f32.mrb[2].mxu1  ;;  %v890_v57 = vpop.f32.mrb[3].mxu0  ;;  %v635_v43 = vrot.slane %v4038_v30, %v3996_v50  ;;  %v647_v47 = vrot.slane %v4038_v30, %v4004_v54 }
 0x1a6   : > { %v960_v58 = vadd.f32 %v959_v56, %v627_v44  ;;  %v891_v59 = vadd.f32 %v890_v57, %v623_v45  ;;  %v961_v49 = vpop.f32.mrb[3].mxu1  ;;  %v643_v44 = vrot.slane %v4038_v30, %v4000_v52  ;;  %v1571_v45 = vld [vmem:[#allocation9 + $0x290] sm:$0xff]  ;;  %v3205_v56 = vpack.c.bf16 %v1586_v36, %v1585_v35 }
 0x1a7   : > { %v1252_v60 = vmax.f32 %v889_v55, 0.0  ;;  %v962_v61 = vadd.f32 %v961_v49, %v631_v46  ;;  %v1572_v46 = vld [vmem:[#allocation9 + $0x298] sm:$0xff]  ;;  %v3173_v55 = vpack.c.bf16 %v1554_v34, %v1553_v31  ;;  %v1603_v57 = vld [vmem:[#allocation9 + $0x390] sm:$0xff] }
 0x1a8   : > { %v1254_v62 = vmax.f32 %v960_v58, 0.0  ;;  %v1253_v63 = vmax.f32 %v891_v59, 0.0  ;;  %v1604_v58 = vld [vmem:[#allocation9 + $0x398] sm:$0xff] }
 0x1a9   : > { %v1290_v1 = vrot.slane %v1252_v60, 4  ;;  %v1255_v2 = vmax.f32 %v962_v61, 0.0  ;;  %v1608_v34 = vld [vmem:[#allocation9 + $0x3b8] sm:$0xff] }
 0x1aa   : > { %v1302_v3 = vrot.slane %v1254_v62, 4  ;;  %v1296_v4 = vrot.slane %v1253_v63, 4 }
 0x1ab   : > { %v1291_v5 = vadd.f32 %v1290_v1, %v1252_v60  ;;  %v1308_v6 = vrot.slane %v1255_v2, 4 }
 0x1ac   : > { %v1303_v7 = vadd.f32 %v1302_v3, %v1254_v62  ;;  %v1297_v8 = vadd.f32 %v1296_v4, %v1253_v63  ;;  %v1555_v62 = vld [vmem:[#allocation9 + $0x210] sm:$0xff]  ;;  %v1556_v63 = vld [vmem:[#allocation9 + $0x218] sm:$0xff] }
 0x1ad   : > { %v1292_v51 = vrot.slane %v1291_v5, 2  ;;  %v1309_v9 = vadd.f32 %v1308_v6, %v1255_v2  ;;  %v3175_v2 = vpack.c.bf16 %v1572_v46, %v1571_v45  ;;  %v1587_v3 = vld [vmem:[#allocation9 + $0x310] sm:$0xff]  ;;  %v1588_v4 = vld [vmem:[#allocation9 + $0x318] sm:$0xff] }
 0x1ae   : > { %v1304_v10 = vrot.slane %v1303_v7, 2  ;;  %v1298_v11 = vrot.slane %v1297_v8, 2 }
 0x1af   : > { %v1293_v12 = vadd.f32 %v1292_v51, %v1291_v5  ;;  %v1310_v13 = vrot.slane %v1309_v9, 2  ;;  %v1573_v5 = vld [vmem:[#allocation9 + $0x2a0] sm:$0xff] }
 0x1b0   : > { %v1305_v14 = vadd.f32 %v1304_v10, %v1303_v7  ;;  %v1299_v15 = vadd.f32 %v1298_v11, %v1297_v8  ;;  %v1574_v10 = vld [vmem:[#allocation9 + $0x2a8] sm:$0xff]  ;;  %v1605_v11 = vld [vmem:[#allocation9 + $0x3a0] sm:$0xff] }
 0x1b1   : > { %v1294_v16 = vrot.slane %v1293_v12, 1  ;;  %v1311_v17 = vadd.f32 %v1310_v13, %v1309_v9  ;;  %v3207_v9 = vpack.c.bf16 %v1604_v58, %v1603_v57 }
 0x1b2   : > { %v1306_v18 = vrot.slane %v1305_v14, 1  ;;  %v1300_v19 = vrot.slane %v1299_v15, 1 }
 0x1b3   : > { %v1295_v20 = vadd.f32 %v1294_v16, %v1293_v12  ;;  %v1312_v21 = vrot.slane %v1311_v17, 1  ;;  %v1606_v12 = vld [vmem:[#allocation9 + $0x3a8] sm:$0xff] }
 0x1b4   : > { %v1307_v22 = vadd.f32 %v1306_v18, %v1305_v14  ;;  %v1301_v23 = vadd.f32 %v1300_v19, %v1299_v15  ;;  %v3177_v19 = vpack.c.bf16 %v1556_v63, %v1555_v62 }
 0x1b5   : > { %v1313_v24 = vadd.f32 %v1312_v21, %v1311_v17  ;;  %v1557_v21 = vld [vmem:[#allocation9 + $0x220] sm:$0xff] }
 0x1b6   : > { %v1380_v25 = vcombine.low %v1295_v20, %v1301_v23  ;;  %v3209_v20 = vpack.c.bf16 %v1588_v4, %v1587_v3  ;;  %v1589_v23 = vld [vmem:[#allocation9 + $0x320] sm:$0xff] }
 0x1b7   : > { %v1381_v48 = vcombine.low %v1307_v22, %v1313_v24  ;;  %v1558_v22 = vld [vmem:[#allocation9 + $0x228] sm:$0xff] }
 0x1b8   : > { %v1402_v26 = vrot.slane %v1380_v25, %v4014_v32 }
 0x1b9   : > { %v1409_v27 = vrot.slane %v1381_v48, %v4014_v32  ;;  %v3179_v48 = vpack.c.bf16 %v1574_v10, %v1573_v5  ;;  %v1562_v10 = vld [vmem:[#allocation9 + $0x248] sm:$0xff] }
 0x1bb   : > { %v1411_v28 = vcombine.low %v1402_v26, %v1409_v27  ;;  %v3211_v26 = vpack.c.bf16 %v1606_v12, %v1605_v11  ;;  %v1590_v27 = vld [vmem:[#allocation9 + $0x328] sm:$0xff]  ;;  %v1593_v11 = vld [vmem:[#allocation9 + $0x340] sm:$0xff] }
 0x1bc   : > { %v3213_v46 = vpack.c.bf16 %v1590_v27, %v1589_v23 }
 0x1bd   : > { %v1425_v29 = vrot.slane %v1411_v28, %v4014_v32  ;;  %v1575_v28 = vld [vmem:[#allocation9 + $0x2b0] sm:$0xff] }
 0x1bf   : > { %v1426_v33 = vcombine.low %v1418_v0, %v1425_v29  ;;  %v1576_v0 = vld [vmem:[#allocation9 + $0x2b8] sm:$0xff] }
 0x1c1   : > { %v4040_v37 = vmul.f32 0.00390625, %v1426_v33  ;;  %v1607_v33 = vld [vmem:[#allocation9 + $0x3b0] sm:$0xff] }
 0x1c3   : > { %v1755_v59 = vrot.slane %v4040_v37, %v4002_v53  ;;  %v1763_v49 = vrot.slane %v4040_v37, %v4004_v54  ;;  %v1751_v60 = vrot.slane %v4040_v37, %v3996_v50  ;;  %v1759_v61 = vrot.slane %v4040_v37, %v4000_v52 }
 0x1c4   : > { %v1030_v1 = vpop.f32.mrb[4].mxu0  ;;  %v1771_v51 = vrot.slane %v4040_v37, %v4022_v41  ;;  %v1779_v16 = vrot.slane %v4040_v37, %v4024_v42 }
 0x1c5   : > { %v1031_v6 = vadd.f32 %v1030_v1, %v635_v43  ;;  %v1101_v7 = vpop.f32.mrb[4].mxu1  ;;  %1892 = vmatprep.mubr.f32.mxu0 %v1755_v59  ;;  %1962 = vmatprep.mubr.f32.mxu1 %v1763_v49  ;;  %v1032_v8 = vpop.f32.mrb[5].mxu0  ;;  %v3181_v43 = vpack.c.bf16 %v1558_v22, %v1557_v21  ;;  %v3215_v59 = vpack.c.bf16 %v1608_v34, %v1607_v33  ;;  %v1592_v49 = vld [vmem:[#allocation9 + $0x338] sm:$0xff]  ;;  %v1609_v1 = vld [vmem:[#allocation9 + $0x3c0] sm:$0xff]  ;;  %v1595_v34 = vld [vmem:[#allocation9 + $0x350] sm:$0xff] }
 0x1c6   : > { %v1102_v13 = vadd.f32 %v1101_v7, %v643_v44  ;;  %v1033_v14 = vadd.f32 %v1032_v8, %v639_v38  ;;  %v1103_v15 = vpop.f32.mrb[5].mxu1  ;;  %1893 = vmatmul.mubr.f32.vlgmr.msra.gmra.mrb[8].mxu0 %v1751_v60  ;;  %1963 = vmatmul.mubr.f32.vlgmr.msra.gmra.mrb[8].mxu1 %v1759_v61  ;;  %v3183_v38 = vpack.c.bf16 %v1576_v0, %v1575_v28  ;;  %v1577_v60 = vld [vmem:[#allocation9 + $0x2c0] sm:$0xff]  ;;  %v1578_v61 = vld [vmem:[#allocation9 + $0x2c8] sm:$0xff]  ;;  %v1612_v21 = vld [vmem:[#allocation9 + $0x3d8] sm:$0xff] }
 0x1c7   : > { %v1256_v17 = vmax.f32 %v1031_v6, 0.0  ;;  %v1104_v18 = vadd.f32 %v1103_v15, %v647_v47  ;;  %3174 = vmatpush3.bf16.msra.mxu0 %v3173_v55  ;;  %3206 = vmatpush3.bf16.msra.mxu1 %v3205_v56  ;;  %v1559_v47 = vld [vmem:[#allocation9 + $0x230] sm:$0xff]  ;;  %v1560_v55 = vld [vmem:[#allocation9 + $0x238] sm:$0xff]  ;;  %v1594_v15 = vld [vmem:[#allocation9 + $0x348] sm:$0xff] }
 0x1c8   : > { %v1258_v24 = vmax.f32 %v1102_v13, 0.0  ;;  %v1257_v25 = vmax.f32 %v1033_v14, 0.0  ;;  %2032 = vmatprep.mubr.f32.mxu0 %v1771_v51  ;;  %2102 = vmatprep.mubr.f32.mxu1 %v1779_v16  ;;  %v1591_v56 = vld [vmem:[#allocation9 + $0x330] sm:$0xff]  ;;  %v3185_v5 = vpack.c.bf16 %v1560_v55, %v1559_v47  ;;  %v3187_v51 = vpack.c.bf16 %v1578_v61, %v1577_v60  ;;  %v1564_v0 = vld [vmem:[#allocation9 + $0x258] sm:$0xff]  ;;  %v1597_v61 = vld [vmem:[#allocation9 + $0x360] sm:$0xff] }
 0x1c9   : > { %v1314_v29 = vrot.slane %v1256_v17, 4  ;;  %v1259_v31 = vmax.f32 %v1104_v18, 0.0  ;;  %3176 = vmatprep.subr.bf16.mxu0 %v3175_v2  ;;  %3208 = vmatprep.subr.bf16.mxu1 %v3207_v9  ;;  %v1610_v2 = vld [vmem:[#allocation9 + $0x3c8] sm:$0xff]  ;;  %v3217_v8 = vpack.c.bf16 %v1592_v49, %v1591_v56  ;;  %v1561_v9 = vld [vmem:[#allocation9 + $0x240] sm:$0xff]  ;;  %v1579_v16 = vld [vmem:[#allocation9 + $0x2d0] sm:$0xff] }
 0x1ca   : > { %v1326_v35 = vrot.slane %v1258_v24, 4  ;;  %v1320_v36 = vrot.slane %v1257_v25, 4  ;;  %v3219_v14 = vpack.c.bf16 %v1610_v2, %v1609_v1  ;;  %v1563_v28 = vld [vmem:[#allocation9 + $0x250] sm:$0xff]  ;;  %v1584_v2 = vld [vmem:[#allocation9 + $0x2f8] sm:$0xff] }
 0x1cb   : > { %v1315_v44 = vadd.f32 %v1314_v29, %v1256_v17  ;;  %v1332_v45 = vrot.slane %v1259_v31, 4  ;;  %3178 = vmatpush3.bf16.msra.mxu0 %v3177_v19  ;;  %3210 = vmatpush3.bf16.msra.mxu1 %v3209_v20  ;;  %v1580_v17 = vld [vmem:[#allocation9 + $0x2d8] sm:$0xff]  ;;  %v1611_v20 = vld [vmem:[#allocation9 + $0x3d0] sm:$0xff]  ;;  %v3193_v55 = vpack.c.bf16 %v1564_v0, %v1563_v28  ;;  %v659_v0 = vrot.slane %v4038_v30, %v4020_v40 }
 0x1cc   : > { %v1327_v57 = vadd.f32 %v1326_v35, %v1258_v24  ;;  %v1321_v58 = vadd.f32 %v1320_v36, %v1257_v25  ;;  %3180 = vmatprep.subr.bf16.mxu0 %v3179_v48  ;;  %3212 = vmatprep.subr.bf16.mxu1 %v3211_v26  ;;  %v3189_v24 = vpack.c.bf16 %v1562_v10, %v1561_v9  ;;  %v1596_v35 = vld [vmem:[#allocation9 + $0x358] sm:$0xff]  ;;  %v1581_v36 = vld [vmem:[#allocation9 + $0x2e0] sm:$0xff] }
 0x1cd   : > { %v1316_v62 = vrot.slane %v1315_v44, 2  ;;  %v1333_v63 = vadd.f32 %v1332_v45, %v1259_v31  ;;  %v3221_v26 = vpack.c.bf16 %v1594_v15, %v1593_v11  ;;  %v3191_v27 = vpack.c.bf16 %v1580_v17, %v1579_v16  ;;  %v1613_v45 = vld [vmem:[#allocation9 + $0x3e0] sm:$0xff]  ;;  %v1599_v11 = vld [vmem:[#allocation9 + $0x370] sm:$0xff]  ;;  %v1666_v16 = vld [vmem:[#allocation9 + $0x588] sm:$0xff] }
 0x1ce   : > { %v1328_v3 = vrot.slane %v1327_v57, 2  ;;  %v1322_v4 = vrot.slane %v1321_v58, 2  ;;  %v3223_v33 = vpack.c.bf16 %v1612_v21, %v1611_v20  ;;  %v3225_v56 = vpack.c.bf16 %v1596_v35, %v1595_v34  ;;  %v1665_v15 = vld [vmem:[#allocation9 + $0x580] sm:$0xff]  ;;  %v1618_v20 = vld [vmem:[#allocation9 + $0x408] sm:$0xff]  ;;  %v1668_v28 = vld [vmem:[#allocation9 + $0x598] sm:$0xff] }
 0x1cf   : > { %v1317_v6 = vadd.f32 %v1316_v62, %v1315_v44  ;;  %v1334_v7 = vrot.slane %v1333_v63, 2  ;;  %3182 = vmatpush3.bf16.msra.mxu0 %v3181_v43  ;;  %3214 = vmatpush3.bf16.msra.mxu1 %v3213_v46  ;;  %v1582_v44 = vld [vmem:[#allocation9 + $0x2e8] sm:$0xff]  ;;  %v1649_v21 = vld [vmem:[#allocation9 + $0x500] sm:$0xff] }
 0x1d0   : > { %v1329_v12 = vadd.f32 %v1328_v3, %v1327_v57  ;;  %v1323_v13 = vadd.f32 %v1322_v4, %v1321_v58  ;;  %3184 = vmatprep.subr.bf16.mxu0 %v3183_v38  ;;  %3216 = vmatprep.subr.bf16.mxu1 %v3215_v59  ;;  %v1614_v46 = vld [vmem:[#allocation9 + $0x3e8] sm:$0xff]  ;;  %v1565_v57 = vld [vmem:[#allocation9 + $0x260] sm:$0xff]  ;;  %v3195_v49 = vpack.c.bf16 %v1582_v44, %v1581_v36  ;;  %v1615_v3 = vld [vmem:[#allocation9 + $0x3f0] sm:$0xff] }
 0x1d1   : > { %v1318_v18 = vrot.slane %v1317_v6, 1  ;;  %v1335_v19 = vadd.f32 %v1334_v7, %v1333_v63  ;;  %v1566_v58 = vld [vmem:[#allocation9 + $0x268] sm:$0xff]  ;;  %v3227_v60 = vpack.c.bf16 %v1614_v46, %v1613_v45  ;;  %v1583_v63 = vld [vmem:[#allocation9 + $0x2f0] sm:$0xff]  ;;  %v1616_v4 = vld [vmem:[#allocation9 + $0x3f8] sm:$0xff]  ;;  %v1767_v45 = vrot.slane %v4040_v37, %v4018_v39 }
 0x1d2   : > { %v1330_v22 = vrot.slane %v1329_v12, 1  ;;  %v1324_v23 = vrot.slane %v1323_v13, 1  ;;  %v1598_v62 = vld [vmem:[#allocation9 + $0x368] sm:$0xff]  ;;  %v3199_v9 = vpack.c.bf16 %v1584_v2, %v1583_v63  ;;  %v3231_v10 = vpack.c.bf16 %v1616_v4, %v1615_v3  ;;  %v1619_v36 = vld [vmem:[#allocation9 + $0x410] sm:$0xff] }
 0x1d3   : > { %v1319_v25 = vadd.f32 %v1318_v18, %v1317_v6  ;;  %v1336_v48 = vrot.slane %v1335_v19, 1  ;;  %3186 = vmatpush3.bf16.msra.mxu0 %v3185_v5  ;;  %3218 = vmatpush3.bf16.msra.mxu1 %v3217_v8  ;;  %v3197_v6 = vpack.c.bf16 %v1566_v58, %v1565_v57  ;;  %v3229_v7 = vpack.c.bf16 %v1598_v62, %v1597_v61  ;;  %v1567_v8 = vld [vmem:[#allocation9 + $0x270] sm:$0xff]  ;;  %v1670_v61 = vld [vmem:[#allocation9 + $0x5a8] sm:$0xff] }
 0x1d4   : > { %v1331_v29 = vadd.f32 %v1330_v22, %v1329_v12  ;;  %v1325_v31 = vadd.f32 %v1324_v23, %v1323_v13  ;;  %3188 = vmatprep.subr.bf16.mxu0 %v3187_v51  ;;  %3220 = vmatprep.subr.bf16.mxu1 %v3219_v14  ;;  %v1568_v51 = vld [vmem:[#allocation9 + $0x278] sm:$0xff]  ;;  %v1633_v13 = vld [vmem:[#allocation9 + $0x480] sm:$0xff]  ;;  %v1634_v14 = vld [vmem:[#allocation9 + $0x488] sm:$0xff]  ;;  %v3267_v23 = vpack.c.bf16 %v1666_v16, %v1665_v15 }
 0x1d5   : > { %v1337_v43 = vadd.f32 %v1336_v48, %v1335_v19  ;;  %v1600_v12 = vld [vmem:[#allocation9 + $0x378] sm:$0xff]  ;;  %v3201_v17 = vpack.c.bf16 %v1568_v51, %v1567_v8  ;;  %v1617_v19 = vld [vmem:[#allocation9 + $0x400] sm:$0xff]  ;;  %v3235_v22 = vpack.c.bf16 %v1634_v14, %v1633_v13  ;;  %v1775_v46 = vrot.slane %v4040_v37, %v4020_v40  ;;  %v1622_v8 = vld [vmem:[#allocation9 + $0x428] sm:$0xff] }
 0x1d6   : > { %v1427_v38 = vcombine.low %v1319_v25, %v1325_v31  ;;  %v3233_v18 = vpack.c.bf16 %v1600_v12, %v1599_v11  ;;  %v1635_v25 = vld [vmem:[#allocation9 + $0x490] sm:$0xff]  ;;  %v1636_v48 = vld [vmem:[#allocation9 + $0x498] sm:$0xff]  ;;  %v3237_v31 = vpack.c.bf16 %v1618_v20, %v1617_v19  ;;  %v1653_v51 = vld [vmem:[#allocation9 + $0x520] sm:$0xff] }
 0x1d7   : > { %v1428_v47 = vcombine.low %v1331_v29, %v1337_v43  ;;  %3190 = vmatpush3.bf16.msra.mxu0 %v3189_v24  ;;  %3222 = vmatpush3.bf16.msra.mxu1 %v3221_v26  ;;  %v1650_v24 = vld [vmem:[#allocation9 + $0x508] sm:$0xff]  ;;  %v651_v26 = vrot.slane %v4038_v30, %v4018_v39  ;;  %v655_v29 = vrot.slane %v4038_v30, %v4022_v41  ;;  %v1620_v43 = vld [vmem:[#allocation9 + $0x418] sm:$0xff]  ;;  %v1639_v14 = vld [vmem:[#allocation9 + $0x4b0] sm:$0xff] }
 0x1d8   : > { %v4063_v59 = vrot.slane %v1427_v38, %v4014_v32  ;;  %3192 = vmatprep.subr.bf16.mxu0 %v3191_v27  ;;  %3224 = vmatprep.subr.bf16.mxu1 %v3223_v33  ;;  %v1667_v27 = vld [vmem:[#allocation9 + $0x590] sm:$0xff]  ;;  %v663_v33 = vrot.slane %v4038_v30, %v4024_v42  ;;  %v3269_v34 = vpack.c.bf16 %v1650_v24, %v1649_v21  ;;  %v1654_v13 = vld [vmem:[#allocation9 + $0x528] sm:$0xff]  ;;  %v1640_v15 = vld [vmem:[#allocation9 + $0x4b8] sm:$0xff] }
 0x1d9   : > { %v4066_v1 = vrot.slane %v1428_v47, %v4014_v32  ;;  %v3239_v35 = vpack.c.bf16 %v1636_v48, %v1635_v25  ;;  %v3271_v38 = vpack.c.bf16 %v1668_v28, %v1667_v27  ;;  %v1651_v47 = vld [vmem:[#allocation9 + $0x510] sm:$0xff]  ;;  %v3241_v37 = vpack.c.bf16 %v1620_v43, %v1619_v36  ;;  %v1672_v19 = vld [vmem:[#allocation9 + $0x5b8] sm:$0xff] }
 0x1da   : > { %v3277_v25 = vpack.c.bf16 %v1654_v13, %v1653_v51  ;;  %v3247_v48 = vpack.c.bf16 %v1640_v15, %v1639_v14  ;;  %v1624_v27 = vld [vmem:[#allocation9 + $0x438] sm:$0xff]  ;;  %v1655_v28 = vld [vmem:[#allocation9 + $0x530] sm:$0xff] }
 0x1db   : > { %v1459_v5 = vcombine.low %v4063_v59, %v4066_v1  ;;  %3194 = vmatpush3.bf16.msra.mxu0 %v3193_v55  ;;  %3226 = vmatpush3.bf16.msra.mxu1 %v3225_v56  ;;  %v1652_v55 = vld [vmem:[#allocation9 + $0x518] sm:$0xff]  ;;  %v1637_v56 = vld [vmem:[#allocation9 + $0x4a0] sm:$0xff]  ;;  %v1627_v15 = vld [vmem:[#allocation9 + $0x450] sm:$0xff] }
 0x1dc   : > { %3196 = vmatprep.subr.bf16.mxu0 %v3195_v49  ;;  %3228 = vmatprep.subr.bf16.mxu1 %v3227_v60  ;;  %v1638_v49 = vld [vmem:[#allocation9 + $0x4a8] sm:$0xff]  ;;  %v1669_v60 = vld [vmem:[#allocation9 + $0x5a0] sm:$0xff]  ;;  %v1699_v1 = vld [vmem:[#allocation9 + $0x690] sm:$0xff] }
 0x1dd   : > { %v3243_v11 = vpack.c.bf16 %v1638_v49, %v1637_v56  ;;  %v3275_v12 = vpack.c.bf16 %v1670_v61, %v1669_v60  ;;  %v1626_v49 = vld [vmem:[#allocation9 + $0x448] sm:$0xff]  ;;  %v1657_v60 = vld [vmem:[#allocation9 + $0x540] sm:$0xff] }
 0x1df   : > { %3198 = vmatpush3.bf16.msra.mxu0 %v3197_v6  ;;  %3230 = vmatpush3.bf16.msra.mxu1 %v3229_v7  ;;  %v3273_v6 = vpack.c.bf16 %v1652_v55, %v1651_v47  ;;  %v1621_v7 = vld [vmem:[#allocation9 + $0x420] sm:$0xff] }
 0x1e0   : > { %3200 = vmatprep.subr.bf16.mxu0 %v3199_v9  ;;  %3232 = vmatprep.subr.bf16.mxu1 %v3231_v10 }
 0x1e3   : > { %3202 = vmatpush3.bf16.msra.mxu0 %v3201_v17  ;;  %3234 = vmatpush3.bf16.msra.mxu1 %v3233_v18  ;;  %v1671_v18 = vld [vmem:[#allocation9 + $0x5b0] sm:$0xff] }
 0x1e4   : > { %v1172_v44 = vpop.f32.mrb[6].mxu0  ;;  %3236 = vmatprep.subr.bf16.mxu0 %v3235_v22  ;;  %3268 = vmatprep.subr.bf16.mxu1 %v3267_v23  ;;  %v3245_v22 = vpack.c.bf16 %v1622_v8, %v1621_v7  ;;  %v1675_v7 = vld [vmem:[#allocation9 + $0x5d0] sm:$0xff]  ;;  %v1676_v8 = vld [vmem:[#allocation9 + $0x5d8] sm:$0xff] }
 0x1e5   : > { %v1173_v57 = vadd.f32 %v1172_v44, %v651_v26  ;;  %v1243_v58 = vpop.f32.mrb[6].mxu1  ;;  %v1174_v30 = vpop.f32.mrb[7].mxu0  ;;  %v1623_v26 = vld [vmem:[#allocation9 + $0x430] sm:$0xff]  ;;  %v1673_v44 = vld [vmem:[#allocation9 + $0x5c0] sm:$0xff] }
 0x1e6   : > { %v1244_v62 = vadd.f32 %v1243_v58, %v659_v0  ;;  %2033 = vmatmul.mubr.f32.vlgmr.msra.gmra.mrb[10].mxu0 %v1767_v45  ;;  %2103 = vmatmul.mubr.f32.vlgmr.msra.gmra.mrb[10].mxu1 %v1775_v46  ;;  %v1175_v63 = vadd.f32 %v1174_v30, %v655_v29  ;;  %v1245_v2 = vpop.f32.mrb[7].mxu1  ;;  %v1674_v45 = vld [vmem:[#allocation9 + $0x5c8] sm:$0xff]  ;;  %v3249_v47 = vpack.c.bf16 %v1624_v27, %v1623_v26  ;;  %v1625_v30 = vld [vmem:[#allocation9 + $0x440] sm:$0xff] }
 0x1e7   : > { %v1260_v3 = vmax.f32 %v1173_v57, 0.0  ;;  %v1246_v4 = vadd.f32 %v1245_v2, %v663_v33  ;;  %3238 = vmatpush3.bf16.msra.mxu0 %v3237_v31  ;;  %3270 = vmatpush3.bf16.msra.mxu1 %v3269_v34  ;;  %v3279_v31 = vpack.c.bf16 %v1672_v19, %v1671_v18  ;;  %v1656_v33 = vld [vmem:[#allocation9 + $0x538] sm:$0xff]  ;;  %v1641_v34 = vld [vmem:[#allocation9 + $0x4c0] sm:$0xff]  ;;  %v1658_v2 = vld [vmem:[#allocation9 + $0x548] sm:$0xff]  ;;  %v3287_v19 = vpack.c.bf16 %v1676_v8, %v1675_v7 }
 0x1e8   : > { %v1262_v9 = vmax.f32 %v1244_v62, 0.0  ;;  %v1261_v10 = vmax.f32 %v1175_v63, 0.0  ;;  %3240 = vmatprep.subr.bf16.mxu0 %v3239_v35  ;;  %3272 = vmatprep.subr.bf16.mxu1 %v3271_v38  ;;  %v1642_v35 = vld [vmem:[#allocation9 + $0x4c8] sm:$0xff]  ;;  %v3281_v57 = vpack.c.bf16 %v1656_v33, %v1655_v28  ;;  %v3283_v63 = vpack.c.bf16 %v1674_v45, %v1673_v44  ;;  %v1647_v44 = vld [vmem:[#allocation9 + $0x4f0] sm:$0xff]  ;;  %v1681_v7 = vld [vmem:[#allocation9 + $0x600] sm:$0xff] }
 0x1e9   : > { %v1338_v16 = vrot.slane %v1260_v3, 4  ;;  %v1263_v17 = vmax.f32 %v1246_v4, 0.0  ;;  %v3251_v58 = vpack.c.bf16 %v1642_v35, %v1641_v34  ;;  %v1644_v4 = vld [vmem:[#allocation9 + $0x4d8] sm:$0xff]  ;;  %v3285_v13 = vpack.c.bf16 %v1658_v2, %v1657_v60 }
 0x1ea   : > { %v1350_v20 = vrot.slane %v1262_v9, 4  ;;  %v1344_v21 = vrot.slane %v1261_v10, 4  ;;  %v1467_v2 = vrot.slane %v1459_v5, %v4014_v32 }
 0x1eb   : > { %v1339_v23 = vadd.f32 %v1338_v16, %v1260_v3  ;;  %v1356_v24 = vrot.slane %v1263_v17, 4  ;;  %3242 = vmatpush3.bf16.msra.mxu0 %v3241_v37  ;;  %3274 = vmatpush3.bf16.msra.mxu1 %v3273_v6  ;;  %v1643_v3 = vld [vmem:[#allocation9 + $0x4d0] sm:$0xff]  ;;  %v1628_v16 = vld [vmem:[#allocation9 + $0x458] sm:$0xff] }
 0x1ec   : > { %v1351_v0 = vadd.f32 %v1350_v20, %v1262_v9  ;;  %v1345_v29 = vadd.f32 %v1344_v21, %v1261_v10  ;;  %3244 = vmatprep.subr.bf16.mxu0 %v3243_v11  ;;  %3276 = vmatprep.subr.bf16.mxu1 %v3275_v12  ;;  %v3253_v10 = vpack.c.bf16 %v1626_v49, %v1625_v30  ;;  %v1659_v20 = vld [vmem:[#allocation9 + $0x550] sm:$0xff]  ;;  %v1660_v21 = vld [vmem:[#allocation9 + $0x558] sm:$0xff] }
 0x1ed   : > { %v1340_v36 = vrot.slane %v1339_v23, 2  ;;  %v1357_v43 = vadd.f32 %v1356_v24, %v1263_v17  ;;  %v3255_v14 = vpack.c.bf16 %v1644_v4, %v1643_v3  ;;  %v1646_v24 = vld [vmem:[#allocation9 + $0x4e8] sm:$0xff]  ;;  %v3257_v28 = vpack.c.bf16 %v1628_v16, %v1627_v15  ;;  %v1632_v30 = vld [vmem:[#allocation9 + $0x478] sm:$0xff]  ;;  %v1731_v16 = vld [vmem:[#allocation9 + $0x790] sm:$0xff] }
 0x1ee   : > { %v1352_v46 = vrot.slane %v1351_v0, 2  ;;  %v1346_v38 = vrot.slane %v1345_v29, 2  ;;  %v1698_v4 = vld [vmem:[#allocation9 + $0x688] sm:$0xff]  ;;  %v1700_v15 = vld [vmem:[#allocation9 + $0x698] sm:$0xff] }
 0x1ef   : > { %v1341_v55 = vadd.f32 %v1340_v36, %v1339_v23  ;;  %v1358_v56 = vrot.slane %v1357_v43, 2  ;;  %3246 = vmatpush3.bf16.msra.mxu0 %v3245_v22  ;;  %3278 = vmatpush3.bf16.msra.mxu1 %v3277_v25  ;;  %v1645_v22 = vld [vmem:[#allocation9 + $0x4e0] sm:$0xff] }
 0x1f0   : > { %v1353_v61 = vadd.f32 %v1352_v46, %v1351_v0  ;;  %v1347_v62 = vadd.f32 %v1346_v38, %v1345_v29  ;;  %3248 = vmatprep.subr.bf16.mxu0 %v3247_v48  ;;  %3280 = vmatprep.subr.bf16.mxu1 %v3279_v31  ;;  %v1677_v25 = vld [vmem:[#allocation9 + $0x5e0] sm:$0xff]  ;;  %v1678_v48 = vld [vmem:[#allocation9 + $0x5e8] sm:$0xff]  ;;  %v3289_v0 = vpack.c.bf16 %v1660_v21, %v1659_v20  ;;  %v1648_v46 = vld [vmem:[#allocation9 + $0x4f8] sm:$0xff] }
 0x1f1   : > { %v1342_v37 = vrot.slane %v1341_v55, 1  ;;  %v1359_v6 = vadd.f32 %v1358_v56, %v1357_v43  ;;  %v1629_v29 = vld [vmem:[#allocation9 + $0x460] sm:$0xff]  ;;  %v1630_v31 = vld [vmem:[#allocation9 + $0x468] sm:$0xff]  ;;  %v3259_v34 = vpack.c.bf16 %v1646_v24, %v1645_v22  ;;  %v3291_v35 = vpack.c.bf16 %v1678_v48, %v1677_v25  ;;  %v1679_v38 = vld [vmem:[#allocation9 + $0x5f0] sm:$0xff] }
 0x1f2   : > { %v1354_v51 = vrot.slane %v1353_v61, 1  ;;  %v1348_v9 = vrot.slane %v1347_v62, 1  ;;  %v1661_v36 = vld [vmem:[#allocation9 + $0x560] sm:$0xff]  ;;  %v1662_v43 = vld [vmem:[#allocation9 + $0x568] sm:$0xff]  ;;  %v3261_v56 = vpack.c.bf16 %v1630_v31, %v1629_v29  ;;  %v3263_v49 = vpack.c.bf16 %v1648_v46, %v1647_v44  ;;  %v1683_v21 = vld [vmem:[#allocation9 + $0x610] sm:$0xff] }
 0x1f3   : > { %v1343_v11 = vadd.f32 %v1342_v37, %v1341_v55  ;;  %v1360_v12 = vrot.slane %v1359_v6, 1  ;;  %3250 = vmatpush3.bf16.msra.mxu0 %v3249_v47  ;;  %3282 = vmatpush3.bf16.msra.mxu1 %v3281_v57  ;;  %v1680_v47 = vld [vmem:[#allocation9 + $0x5f8] sm:$0xff]  ;;  %v3293_v57 = vpack.c.bf16 %v1662_v43, %v1661_v36  ;;  %v1729_v37 = vld [vmem:[#allocation9 + $0x780] sm:$0xff]  ;;  %v1715_v24 = vld [vmem:[#allocation9 + $0x710] sm:$0xff] }
 0x1f4   : > { %v1355_v17 = vadd.f32 %v1354_v51, %v1353_v61  ;;  %v1349_v18 = vadd.f32 %v1348_v9, %v1347_v62  ;;  %3252 = vmatprep.subr.bf16.mxu0 %v3251_v58  ;;  %3284 = vmatprep.subr.bf16.mxu1 %v3283_v63  ;;  %v1631_v58 = vld [vmem:[#allocation9 + $0x470] sm:$0xff]  ;;  %v3295_v60 = vpack.c.bf16 %v1680_v47, %v1679_v38  ;;  %v1664_v62 = vld [vmem:[#allocation9 + $0x578] sm:$0xff]  ;;  %v1697_v63 = vld [vmem:[#allocation9 + $0x680] sm:$0xff] }
 0x1f5   : > { %v1361_v23 = vadd.f32 %v1360_v12, %v1359_v6  ;;  %v1663_v61 = vld [vmem:[#allocation9 + $0x570] sm:$0xff]  ;;  %v1730_v6 = vld [vmem:[#allocation9 + $0x788] sm:$0xff]  ;;  %v3265_v51 = vpack.c.bf16 %v1632_v30, %v1631_v58  ;;  %v1684_v22 = vld [vmem:[#allocation9 + $0x618] sm:$0xff] }
 0x1f6   : > { %v1429_v26 = vcombine.low %v1343_v11, %v1349_v18  ;;  %v3297_v9 = vpack.c.bf16 %v1664_v62, %v1663_v61  ;;  %v1713_v11 = vld [vmem:[#allocation9 + $0x700] sm:$0xff]  ;;  %v1714_v12 = vld [vmem:[#allocation9 + $0x708] sm:$0xff]  ;;  %v1716_v25 = vld [vmem:[#allocation9 + $0x718] sm:$0xff] }
 0x1f7   : > { %v1430_v27 = vcombine.low %v1355_v17, %v1361_v23  ;;  %3254 = vmatpush3.bf16.msra.mxu0 %v3253_v10  ;;  %3286 = vmatpush3.bf16.msra.mxu1 %v3285_v13  ;;  %v1682_v10 = vld [vmem:[#allocation9 + $0x608] sm:$0xff]  ;;  %v3299_v13 = vpack.c.bf16 %v1698_v4, %v1697_v63  ;;  %v3333_v5 = vpack.c.bf16 %v1714_v12, %v1713_v11  ;;  %v1732_v17 = vld [vmem:[#allocation9 + $0x798] sm:$0xff]  ;;  %v1701_v48 = vld [vmem:[#allocation9 + $0x6a0] sm:$0xff] }
 0x1f8   : > { %v1451_v33 = vrot.slane %v1429_v26, %v4014_v32  ;;  %3256 = vmatprep.subr.bf16.mxu0 %v3255_v14  ;;  %3288 = vmatprep.subr.bf16.mxu1 %v3287_v19  ;;  %v3331_v14 = vpack.c.bf16 %v1730_v6, %v1729_v37  ;;  %v3303_v26 = vpack.c.bf16 %v1700_v15, %v1699_v1  ;;  %v1685_v31 = vld [vmem:[#allocation9 + $0x620] sm:$0xff]  ;;  %v1718_v43 = vld [vmem:[#allocation9 + $0x728] sm:$0xff]  ;;  %v1703_v44 = vld [vmem:[#allocation9 + $0x6b0] sm:$0xff] }
 0x1f9   : > { %v1458_v45 = vrot.slane %v1430_v27, %v4014_v32  ;;  %v1702_v27 = vld [vmem:[#allocation9 + $0x6a8] sm:$0xff]  ;;  %v3337_v29 = vpack.c.bf16 %v1716_v25, %v1715_v24  ;;  %v1717_v36 = vld [vmem:[#allocation9 + $0x720] sm:$0xff]  ;;  %v1736_v46 = vld [vmem:[#allocation9 + $0x7b8] sm:$0xff] }
 0x1fa   : > { %v3341_v38 = vpack.c.bf16 %v1718_v43, %v1717_v36  ;;  %v1687_v47 = vld [vmem:[#allocation9 + $0x630] sm:$0xff]  ;;  %v1720_v30 = vld [vmem:[#allocation9 + $0x738] sm:$0xff]  ;;  %v1737_v61 = vld [vmem:[#allocation9 + $0x7c0] sm:$0xff] }
 0x1fb   : > { %v1460_v55 = vcombine.low %v1451_v33, %v1458_v45  ;;  %3258 = vmatpush3.bf16.msra.mxu0 %v3257_v28  ;;  %3290 = vmatpush3.bf16.msra.mxu1 %v3289_v0  ;;  %v1733_v28 = vld [vmem:[#allocation9 + $0x7a0] sm:$0xff]  ;;  %v1686_v33 = vld [vmem:[#allocation9 + $0x628] sm:$0xff]  ;;  %v1704_v45 = vld [vmem:[#allocation9 + $0x6b8] sm:$0xff] }
 0x1fc   : > { %3260 = vmatprep.subr.bf16.mxu0 %v3259_v34  ;;  %3292 = vmatprep.subr.bf16.mxu1 %v3291_v35  ;;  %v3307_v34 = vpack.c.bf16 %v1702_v27, %v1701_v48  ;;  %v1719_v58 = vld [vmem:[#allocation9 + $0x730] sm:$0xff]  ;;  %v1738_v62 = vld [vmem:[#allocation9 + $0x7c8] sm:$0xff]  ;;  %v1740_v11 = vld [vmem:[#allocation9 + $0x7d8] sm:$0xff] }
 0x1fd   : > { %v1474_v3 = vrot.slane %v1460_v55, %v4014_v32  ;;  %v3301_v32 = vpack.c.bf16 %v1682_v10, %v1681_v7  ;;  %v1688_v55 = vld [vmem:[#allocation9 + $0x638] sm:$0xff]  ;;  %v1690_v4 = vld [vmem:[#allocation9 + $0x648] sm:$0xff]  ;;  %v3347_v6 = vpack.c.bf16 %v1738_v62, %v1737_v61  ;;  %v1721_v7 = vld [vmem:[#allocation9 + $0x740] sm:$0xff] }
 0x1fe   : > { %v3313_v63 = vpack.c.bf16 %v1688_v55, %v1687_v47  ;;  %v1739_v10 = vld [vmem:[#allocation9 + $0x7d0] sm:$0xff]  ;;  %v1692_v1 = vld [vmem:[#allocation9 + $0x658] sm:$0xff]  ;;  %v1694_v24 = vld [vmem:[#allocation9 + $0x668] sm:$0xff] }
 0x1ff   : > { %v1475_v8 = vcombine.low %v1467_v2, %v1474_v3  ;;  %3262 = vmatpush3.bf16.msra.mxu0 %v3261_v56  ;;  %3294 = vmatpush3.bf16.msra.mxu1 %v3293_v57  ;;  %v3311_v56 = vpack.c.bf16 %v1704_v45, %v1703_v44  ;;  %v3345_v2 = vpack.c.bf16 %v1720_v30, %v1719_v58  ;;  %v1689_v3 = vld [vmem:[#allocation9 + $0x640] sm:$0xff]  ;;  %v1723_v15 = vld [vmem:[#allocation9 + $0x750] sm:$0xff]  ;;  %v1728_v36 = vld [vmem:[#allocation9 + $0x778] sm:$0xff] }
 0x200   : > { %3264 = vmatprep.subr.bf16.mxu0 %v3263_v49  ;;  %3296 = vmatprep.subr.bf16.mxu1 %v3295_v60  ;;  %v1705_v49 = vld [vmem:[#allocation9 + $0x6c0] sm:$0xff]  ;;  %v1706_v60 = vld [vmem:[#allocation9 + $0x6c8] sm:$0xff]  ;;  %v3317_v12 = vpack.c.bf16 %v1690_v4, %v1689_v3  ;;  %v1711_v27 = vld [vmem:[#allocation9 + $0x6f0] sm:$0xff] }
 0x201   : > { %v4089_v59 = vmul.f32 0.00390625, %v1475_v8  ;;  %v3315_v37 = vpack.c.bf16 %v1706_v60, %v1705_v49  ;;  %v1722_v8 = vld [vmem:[#allocation9 + $0x748] sm:$0xff] }
 0x203   : > { %3266 = vmatpush3.bf16.msra.mxu0 %v3265_v51  ;;  %3298 = vmatpush3.bf16.msra.mxu1 %v3297_v9  ;;  %v1787_v18 = vrot.slane %v4089_v59, %v4002_v53  ;;  %v1795_v19 = vrot.slane %v4089_v59, %v4004_v54  ;;  %v1783_v20 = vrot.slane %v4089_v59, %v3996_v50  ;;  %v1734_v54 = vld [vmem:[#allocation9 + $0x7a8] sm:$0xff]  ;;  %v1707_v51 = vld [vmem:[#allocation9 + $0x6d0] sm:$0xff]  ;;  %v1708_v9 = vld [vmem:[#allocation9 + $0x6d8] sm:$0xff] }
 0x204   : > { %3300 = vmatprep.subr.bf16.mxu0 %v3299_v13  ;;  %3332 = vmatprep.subr.bf16.mxu1 %v3331_v14  ;;  %v1791_v23 = vrot.slane %v4089_v59, %v4000_v52  ;;  %v3335_v53 = vpack.c.bf16 %v1732_v17, %v1731_v16  ;;  %v1803_v50 = vrot.slane %v4089_v59, %v4022_v41  ;;  %v1735_v41 = vld [vmem:[#allocation9 + $0x7b0] sm:$0xff]  ;;  %v1724_v16 = vld [vmem:[#allocation9 + $0x758] sm:$0xff]  ;;  %v1709_v17 = vld [vmem:[#allocation9 + $0x6e0] sm:$0xff] }
 0x205   : > { %2172 = vmatprep.mubr.f32.mxu0 %v1787_v18  ;;  %2242 = vmatprep.mubr.f32.mxu1 %v1795_v19  ;;  %v1811_v0 = vrot.slane %v4089_v59, %v4024_v42  ;;  %v3305_v52 = vpack.c.bf16 %v1684_v22, %v1683_v21  ;;  %v3339_v35 = vpack.c.bf16 %v1734_v54, %v1733_v28  ;;  %v1691_v14 = vld [vmem:[#allocation9 + $0x650] sm:$0xff]  ;;  %v1710_v18 = vld [vmem:[#allocation9 + $0x6e8] sm:$0xff]  ;;  %v1741_v19 = vld [vmem:[#allocation9 + $0x7e0] sm:$0xff] }
 0x206   : > { %2173 = vmatmul.mubr.f32.vlgmr.msra.gmra.mrb[12].mxu0 %v1783_v20  ;;  %2243 = vmatmul.mubr.f32.vlgmr.msra.gmra.mrb[12].mxu1 %v1791_v23  ;;  %v3309_v42 = vpack.c.bf16 %v1686_v33, %v1685_v31  ;;  %v3343_v57 = vpack.c.bf16 %v1736_v46, %v1735_v41  ;;  %v3349_v13 = vpack.c.bf16 %v1722_v8, %v1721_v7  ;;  %v1742_v20 = vld [vmem:[#allocation9 + $0x7e8] sm:$0xff]  ;;  %v1693_v23 = vld [vmem:[#allocation9 + $0x660] sm:$0xff]  ;;  %v1712_v28 = vld [vmem:[#allocation9 + $0x6f8] sm:$0xff] }
 0x207   : > { %3302 = vmatpush3.bf16.msra.mxu0 %v3301_v32  ;;  %3334 = vmatpush3.bf16.msra.mxu1 %v3333_v5  ;;  %v3319_v32 = vpack.c.bf16 %v1708_v9, %v1707_v51  ;;  %v3351_v5 = vpack.c.bf16 %v1740_v11, %v1739_v10  ;;  %v3321_v21 = vpack.c.bf16 %v1692_v1, %v1691_v14  ;;  %v1743_v54 = vld [vmem:[#allocation9 + $0x7f0] sm:$0xff] }
 0x208   : > { %2312 = vmatprep.mubr.f32.mxu0 %v1803_v50  ;;  %2382 = vmatprep.mubr.f32.mxu1 %v1811_v0  ;;  %v3353_v22 = vpack.c.bf16 %v1724_v16, %v1723_v15  ;;  %v3323_v25 = vpack.c.bf16 %v1710_v18, %v1709_v17  ;;  %v3355_v48 = vpack.c.bf16 %v1742_v20, %v1741_v19  ;;  %v1744_v50 = vld [vmem:[#allocation9 + $0x7f8] sm:$0xff] }
 0x209   : > { %3304 = vmatprep.subr.bf16.mxu0 %v3303_v26  ;;  %3336 = vmatprep.subr.bf16.mxu1 %v3335_v53  ;;  %v1725_v26 = vld [vmem:[#allocation9 + $0x760] sm:$0xff]  ;;  %v1726_v53 = vld [vmem:[#allocation9 + $0x768] sm:$0xff]  ;;  %v3325_v0 = vpack.c.bf16 %v1694_v24, %v1693_v23  ;;  %v3327_v31 = vpack.c.bf16 %v1712_v28, %v1711_v27  ;;  %v3359_v33 = vpack.c.bf16 %v1744_v50, %v1743_v54 }
 0x20a   : > { %v1799_v45 = vrot.slane %v4089_v59, %v4018_v39  ;;  %v1807_v41 = vrot.slane %v4089_v59, %v4020_v40 }
 0x20b   : > { %3306 = vmatpush3.bf16.msra.mxu0 %v3305_v52  ;;  %3338 = vmatpush3.bf16.msra.mxu1 %v3337_v29  ;;  %v3357_v52 = vpack.c.bf16 %v1726_v53, %v1725_v26  ;;  %v1695_v29 = vld [vmem:[#allocation9 + $0x670] sm:$0xff] }
 0x20c   : > { %3308 = vmatprep.subr.bf16.mxu0 %v3307_v34  ;;  %3340 = vmatprep.subr.bf16.mxu1 %v3339_v35  ;;  %v1696_v34 = vld [vmem:[#allocation9 + $0x678] sm:$0xff]  ;;  %v1727_v35 = vld [vmem:[#allocation9 + $0x770] sm:$0xff] }
 0x20d   : > { %v3329_v43 = vpack.c.bf16 %v1696_v34, %v1695_v29  ;;  %v3361_v44 = vpack.c.bf16 %v1728_v36, %v1727_v35 }
 0x20f   : > { %3310 = vmatpush3.bf16.msra.mxu0 %v3309_v42  ;;  %3342 = vmatpush3.bf16.msra.mxu1 %v3341_v38  ;;  %v1745_v38 = vld [vmem:[%s4202_s4] sm:$0x1] }
 0x210   : > { %3312 = vmatprep.subr.bf16.mxu0 %v3311_v56  ;;  %3344 = vmatprep.subr.bf16.mxu1 %v3343_v57 }
 0x213   : > { %3314 = vmatpush3.bf16.msra.mxu0 %v3313_v63  ;;  %3346 = vmatpush3.bf16.msra.mxu1 %v3345_v2 }
 0x214   : > { %3316 = vmatprep.subr.bf16.mxu0 %v3315_v37  ;;  %3348 = vmatprep.subr.bf16.mxu1 %v3347_v6 }
 0x217   : > { %3318 = vmatpush3.bf16.msra.mxu0 %v3317_v12  ;;  %3350 = vmatpush3.bf16.msra.mxu1 %v3349_v13 }
 0x218   : > { %3320 = vmatprep.subr.bf16.mxu0 %v3319_v32  ;;  %3352 = vmatprep.subr.bf16.mxu1 %v3351_v5 }
 0x21b   : > { %3322 = vmatpush3.bf16.msra.mxu0 %v3321_v21  ;;  %3354 = vmatpush3.bf16.msra.mxu1 %v3353_v22 }
 0x21c   : > { %3324 = vmatprep.subr.bf16.mxu0 %v3323_v25  ;;  %3356 = vmatprep.subr.bf16.mxu1 %v3355_v48 }
 0x21f   : > { %3326 = vmatpush3.bf16.msra.mxu0 %v3325_v0  ;;  %3358 = vmatpush3.bf16.msra.mxu1 %v3357_v52 }
 0x220   : > { %3328 = vmatprep.subr.bf16.mxu0 %v3327_v31  ;;  %3360 = vmatprep.subr.bf16.mxu1 %v3359_v33 }
 0x223   : > { %3330 = vmatpush3.bf16.msra.mxu0 %v3329_v43  ;;  %3362 = vmatpush3.bf16.msra.mxu1 %v3361_v44 }
 0x226   : > { %2313 = vmatmul.mubr.f32.vlgmr.msra.gmra.mrb[14].mxu0 %v1799_v45  ;;  %2383 = vmatmul.mubr.f32.vlgmr.msra.gmra.mrb[14].mxu1 %v1807_v41 }
 0x299   : > { %v2603_v46 = vpop.f32.mrb[8].mxu0  ;;  %v2638_v42 = vpop.f32.mrb[8].mxu1 }
 0x29a   : > { %v2604_v47 = vpop.f32.mrb[9].mxu0  ;;  %v2639_v55 = vpop.f32.mrb[9].mxu1 }
 0x29b   : > { %v2605_v56 = vadd.f32 %v2604_v47, %v2603_v46  ;;  %v2640_v57 = vadd.f32 %v2639_v55, %v2638_v42 }
 0x29d   : > { %v1895_v58 = vadd.f32 %v2605_v56, %v1745_v38 }
 0x29f   : > { %v1965_v30 = vadd.f32 %v2640_v57, %v1895_v58 }
 0x2b9   : > { %v2673_v49 = vpop.f32.mrb[10].mxu0  ;;  %v2708_v60 = vpop.f32.mrb[10].mxu1 }
 0x2ba   : > { %v2674_v39 = vpop.f32.mrb[11].mxu0  ;;  %v2709_v61 = vpop.f32.mrb[11].mxu1 }
 0x2bb   : > { %v2675_v62 = vadd.f32 %v2674_v39, %v2673_v49  ;;  %v2710_v40 = vadd.f32 %v2709_v61, %v2708_v60 }
 0x2bd   : > { %v2035_v59 = vadd.f32 %v2675_v62, %v1965_v30 }
 0x2bf   : > { %v2105_v63 = vadd.f32 %v2710_v40, %v2035_v59 }
 0x2d9   : > { %v2743_v2 = vpop.f32.mrb[12].mxu0  ;;  %v2778_v3 = vpop.f32.mrb[12].mxu1 }
 0x2da   : > { %v2744_v4 = vpop.f32.mrb[13].mxu0  ;;  %v2779_v37 = vpop.f32.mrb[13].mxu1 }
 0x2db   : > { %v2745_v6 = vadd.f32 %v2744_v4, %v2743_v2  ;;  %v2780_v7 = vadd.f32 %v2779_v37, %v2778_v3 }
 0x2dd   : > { %v2175_v8 = vadd.f32 %v2745_v6, %v2105_v63 }
 0x2df   : > { %v2245_v51 = vadd.f32 %v2780_v7, %v2175_v8 }
 0x2f9   : > { %v2813_v9 = vpop.f32.mrb[14].mxu0  ;;  %v2848_v10 = vpop.f32.mrb[14].mxu1 }
 0x2fa   : > { %v2814_v11 = vpop.f32.mrb[15].mxu0  ;;  %v2849_v12 = vpop.f32.mrb[15].mxu1 }
 0x2fb   : > { %v2815_v13 = vadd.f32 %v2814_v11, %v2813_v9  ;;  %v2850_v14 = vadd.f32 %v2849_v12, %v2848_v10 }
 0x2fd   : > { %v2315_v1 = vadd.f32 %v2815_v13, %v2245_v51 }
 0x2ff   : > { %v2385_v32 = vadd.f32 %v2850_v14, %v2315_v1 }
 0x301   : > { %v2389_v5 = vmul.f32 0.1, %v2385_v32  ;;  %2388 = vst [vmem:[%s326_s10] sm:$0x1] %v2385_v32 }
 0x302   : > { %3593 = shalt.err (!%p3590_p0)
}
 0x303   : > { %s3594_s9 = scalar_lea.hbm %s4118_s17, 16  ;;  %s3598_s18 = scalar_lea.hbm %s4203_s5, 32 }
 0x304   : > { %p3595_p4 = scmp.ne.s32.totalorder %s4118_s17, %s3594_s9  ;;  %p3599_p1 = scmp.lt.u32.totalorder %s4118_s17, %s4203_s5 }
 0x305   : > { %p3600_p12 = scmp.lt.u32.totalorder %s3598_s18, %s3594_s9  ;;  %p3602_p13 = scmp.lt.u32.totalorder %s3594_s9, %s4118_s17 }
 0x306   : > { %p3596_p2 = pnand %p3595_p4, %p3907_p5 }
 0x307   : > { %p3601_p11 = por %p3600_p12, %p3599_p1 }
 0x308   : > { %p3597_p8 = pneg %p3596_p2 }
 0x309   : > { %p3603_p6 = por %p3602_p13, %p3601_p11 }
 0x30b   : > { %p3604_p10 = pnand %p3603_p6, %p3597_p8 }
 0x30d   : > { %3607 = shalt.err (!%p3604_p10)
}
 0x30e   : > { %3377 = dma.vmem_to_hbm [thread:$0]  (%p3907_p5), %s4120_s13, 16, %s4118_s17, %s2392_s6   ;;  %2390 = vst [vmem:[%s332_s15] sm:$0x1] %v2389_v5 }
 0x30f   : > { %s2396_s21 = scalar_lea.sflag [#allocation13], %s3959_s11  ;;  %s3608_s8 = scalar_lea.vmem %s4127_s14, 16 }
 0x310   : > { %p3609_p3 = scmp.ne.s32.totalorder %s4127_s14, %s3608_s8  ;;  %s3714_s29 = smov [#allocation12]  }
 0x311   : > { %s3612_s7 = sshll.u32 %s3714_s29, 4  ;;  %s3613_s7 = int_to_ptr.vmem [resolvable:$false] %s3612_s7 }
 0x312   : > { %p3610_p7 = pnand %p3609_p3, %p3907_p5  ;;  %s3614_s9 = scalar_lea.vmem %s3613_s7, 32 }
 0x313   : > { %p3615_p0 = scmp.lt.s32.totalorder %s4127_s14, %s3613_s7  ;;  %p3616_p4 = scmp.lt.s32.totalorder %s3614_s9, %s3608_s8 }
 0x314   : > { %p3611_p9 = pneg %p3610_p7 }
 0x315   : > { %p3617_p2 = por %p3616_p4, %p3615_p0 }
 0x317   : > { %p3618_p8 = pnand %p3617_p2, %p3611_p9 }
 0x319   : > { %3621 = shalt.err (!%p3618_p8)
}
 0x31a   : > { %s3622_s11 = scalar_lea.hbm %s4125_s30, 16  ;;  %s3626_s17 = scalar_lea.hbm %s4228_s27, 32 }
 0x31b   : > { %p3623_p1 = scmp.ne.s32.totalorder %s4125_s30, %s3622_s11  ;;  %p3627_p13 = scmp.lt.u32.totalorder %s4125_s30, %s4228_s27 }
 0x31c   : > { %p3628_p6 = scmp.lt.u32.totalorder %s3626_s17, %s3622_s11  ;;  %p3630_p3 = scmp.lt.u32.totalorder %s3622_s11, %s4125_s30 }
 0x31d   : > { %p3624_p12 = pnand %p3623_p1, %p3907_p5 }
 0x31e   : > { %p3629_p10 = por %p3628_p6, %p3627_p13 }
 0x31f   : > { %p3625_p11 = pneg %p3624_p12 }
 0x320   : > { %p3631_p7 = por %p3630_p3, %p3629_p10 }
 0x322   : > { %p3632_p9 = pnand %p3631_p7, %p3625_p11 }
 0x324   : > { %3635 = shalt.err (!%p3632_p9)
}
 0x325   : > { %3378 = dma.vmem_to_hbm [thread:$0]  (%p3907_p5), %s4127_s14, 16, %s4125_s30, %s2396_s21  }
 0x326 PF: > { %s4229_s16 = sld [smem:[#allocation19_spill]]  ;;  %s4230_s18 = sld [smem:[#allocation20_spill]] }
 0x327   : > { %p4232_p4 = scmp.ge.s32.totalorder %s3702_s26, 2 }
 0x32c   : > { %s2433_s24 = sand.u32 1, %s4229_s16   ;;  %p4231_p0 = scmp.ne.s32.totalorder %s4230_s18, 0 }
 0x32d   : > { %s2434_s20 = scalar_lea.sflag [#allocation5], %s2433_s24 }
 0x32e   : > { %p3396_p2 = pnand %p4232_p4, %p4231_p0 }
 0x330   : > { %3673 = dma.done.wait (!%p3396_p2), %s2434_s20, 16  }
 0x331   : > { %3675 = vsyncadd (!%p3396_p2), %s2434_s20, 4294967280  ;;  %s2442_s8 = scalar_lea.sflag [#allocation13], %s2433_s24 }
 0x332   : > { %3677 = dma.done.wait (!%p3396_p2), %s2442_s8, 16  }
 0x333   : > { %3679 = vsyncadd (!%p3396_p2), %s2442_s8, 4294967280  ;;  %s28_s26 = sadd.s32 1, %s3702_s26   ;;  %s4233_s21 = smov %s3686_s22 }
 0x334   : > { %p25_p8 = scmp.ge.s32.totalorder %s28_s26, 4   ;;  %s4234_s22 = smov %s3690_s23 }
 0x335   : > { %s4235_s23 = smov %s3916_s19  ;;  %s4236_s24 = smov %s3698_s25 }
 0x336   : > { %s4237_s25 = smov %s4239_s28  ;;  %27 = sbr.rel (!%p25_p8) target bundleno = 12 (0xc), region = 122 }
 0x33d   :  { %2446 = vsyncpa [#allocation4], 1 }
 0x33e   :  { %2448 = vsyncpa [#allocation4 + $0x1], 1 }
 0x33f   :  { %2449 = vsyncpa [#allocation7], 1 }
 0x340   :  { %2450 = vsyncpa [#allocation10], 1 }
 0x341   :  { %2451 = vsyncpa [#allocation5], 1 }
 0x342   :  { %2453 = vsyncpa [#allocation5 + $0x1], 1 }
 0x343   :  { %2454 = vsyncpa [#allocation13], 1 }
 0x344   :  { %2456 = vsyncpa [#allocation13 + $0x1], 1 }

</bundles_post_ra>
